<compile_context>
chip_gen: v7x
topology: tpu7x:2x2x1
jax: 0.10.0
libtpu: 0.0.40
codegen_flags: <defaults>
</compile_context>

<pallas_src>
import functools
import math

import jax
import jax.numpy as jnp
from jax.experimental import pallas as pl
from jax.experimental.pallas import tpu as pltpu

_LN_EPS = 1e-5        # torch.nn.LayerNorm default
_NEG_INF = -1e30      # stands in for float('-inf') in the causal mask


# ----------------------------- Pallas kernels -----------------------------

def _mha_block_kernel(xq_ref, xkv_ref, wq_ref, bq_ref, wkv_ref, bkv_ref,
                      wo_ref, bo_ref, g_ref, beta_ref, o_ref, acc_ref,
                      *, nhead, causal):
    """One (batch, q-tile) block: LayerNorm(out_proj(attn(xq, xkv)) + bo + xq)."""
    xq = xq_ref[...]                              # (tq, D)  q rows + residual
    tq, D = xq.shape
    sk = xkv_ref.shape[0]
    dh = D // nhead

    q = jnp.dot(xq, wq_ref[...], preferred_element_type=jnp.float32) + bq_ref[...]
    q = q * (1.0 / math.sqrt(dh))                 # fold softmax scale into q once
    kv = jnp.dot(xkv_ref[...], wkv_ref[...],
                 preferred_element_type=jnp.float32) + bkv_ref[...]
    k, v = kv[:, :D], kv[:, D:]
    wo = wo_ref[...]

    if causal:
        # In-kernel causal mask (free VPU iota/compare work, no HBM/VMEM mask).
        q0 = pl.program_id(1) * tq                # global row offset of this q tile
        row = jax.lax.broadcasted_iota(jnp.int32, (tq, sk), 0) + q0
        col = jax.lax.broadcasted_iota(jnp.int32, (tq, sk), 1)
        neg = jnp.where(col > row, _NEG_INF, 0.0)

    # Residual + out-proj bias seed the accumulator; each head adds its
    # softmax(QK^T)V @ wo_h contribution. Per-head scratch store bounds live
    # ranges and fuses the output projection (no lane-axis concatenate).
    acc_ref[...] = xq + bo_ref[...]
    for h in range(nhead):
        sl = slice(h * dh, (h + 1) * dh)
        s = jax.lax.dot_general(q[:, sl], k[:, sl], (((1,), (1,)), ((), ())),
                                preferred_element_type=jnp.float32)   # (tq, sk)
        if causal:
            s = s + neg
        p = jnp.exp(s - jnp.max(s, axis=-1, keepdims=True))
        inv = pl.reciprocal(jnp.sum(p, axis=-1, keepdims=True), approx=True)
        o_h = jnp.dot(p, v[:, sl], preferred_element_type=jnp.float32) * inv
        acc_ref[...] += jnp.dot(o_h, wo[sl, :], preferred_element_type=jnp.float32)

    r = acc_ref[...]
    mean = jnp.mean(r, axis=-1, keepdims=True)
    rc = r - mean
    var = jnp.mean(rc * rc, axis=-1, keepdims=True)
    o_ref[...] = (rc * jax.lax.rsqrt(var + _LN_EPS) * g_ref[...]
                  + beta_ref[...]).astype(o_ref.dtype)


def _ffn_block_kernel(x_ref, w1_ref, b1_ref, w2_ref, b2_ref, g_ref, beta_ref, o_ref):
    """LayerNorm(w2(relu(w1(x))) + x) on a row tile; the hidden never leaves VMEM."""
    x = x_ref[...]                                # (bn, D)
    h = jnp.dot(x, w1_ref[...], preferred_element_type=jnp.float32) + b1_ref[...]
    h = jnp.maximum(h, 0.0)
    y = jnp.dot(h, w2_ref[...], preferred_element_type=jnp.float32) + b2_ref[...]
    r = y + x
    mean = jnp.mean(r, axis=-1, keepdims=True)
    rc = r - mean
    var = jnp.mean(rc * rc, axis=-1, keepdims=True)
    o_ref[...] = (rc * jax.lax.rsqrt(var + _LN_EPS) * g_ref[...]
                  + beta_ref[...]).astype(o_ref.dtype)


def _layernorm_kernel(x_ref, g_ref, beta_ref, o_ref):
    x = x_ref[...]
    mean = jnp.mean(x, axis=-1, keepdims=True)
    xc = x - mean
    var = jnp.mean(xc * xc, axis=-1, keepdims=True)
    o_ref[...] = (xc * jax.lax.rsqrt(var + _LN_EPS) * g_ref[...]
                  + beta_ref[...]).astype(o_ref.dtype)


# ----------------------------- pure-JAX references (correctness gate) -----------------------------

def _layernorm_ref(x, g, b):
    mean = jnp.mean(x, axis=-1, keepdims=True)
    var = jnp.mean((x - mean) ** 2, axis=-1, keepdims=True)
    return (x - mean) * jax.lax.rsqrt(var + _LN_EPS) * g + b


def _mha_block_ref(xq, xkv, p, g, beta, causal, nhead, batch, sq, sk):
    D = xq.shape[1]
    dh = D // nhead
    q = xq @ p["wq"] + p["bq"]
    kv = xkv @ p["wkv"] + p["bkv"]
    k, v = kv[:, :D], kv[:, D:]
    qh = q.reshape(batch, sq, nhead, dh).transpose(0, 2, 1, 3)
    kh = k.reshape(batch, sk, nhead, dh).transpose(0, 2, 1, 3)
    vh = v.reshape(batch, sk, nhead, dh).transpose(0, 2, 1, 3)
    s = jnp.einsum("bhqd,bhkd->bhqk", qh, kh) / math.sqrt(dh)
    if causal:
        masked = jnp.arange(sk)[None, :] > jnp.arange(sq)[:, None]
        s = s + jnp.where(masked, _NEG_INF, 0.0)[None, None]
    pw = jax.nn.softmax(s, axis=-1)
    o = jnp.einsum("bhqk,bhkd->bhqd", pw, vh).transpose(0, 2, 1, 3).reshape(batch * sq, D)
    return _layernorm_ref(o @ p["wo"] + p["bo"] + xq, g, beta)


def _ffn_block_ref(x, w1, b1, w2, b2, g, beta):
    h = jnp.maximum(x @ w1 + b1, 0.0)
    return _layernorm_ref(h @ w2 + b2 + x, g, beta)


# ----------------------------- spec helpers -----------------------------

def _const_spec(shape):
    """Revision-constant block: constant index_map + single VMEM buffer."""
    return pl.BlockSpec(shape, lambda *_: (0, 0), pipeline_mode=pl.Buffered(1))


def _vmem_limit(n_double, n_single):
    """Scoped-VMEM limit: f32 elem counts for double/single-buffered blocks + headroom."""
    est = 4 * (2 * n_double + n_single)
    return int(min(128 << 20, max(32 << 20, 2 * est)))


def _q_tile(sq, cap=256):
    """Largest q tile <= cap dividing sq (multiple of 8 when tiling), else sq."""
    if sq <= cap:
        return sq
    for t in range(cap, 7, -8):
        if sq % t == 0:
            return t
    return sq   # TODO(synk): pad awkward sequence lengths to a multiple of 8


def _row_tiling(n, cap=512):
    """(block_rows, padded_rows): pad rows so a cap-sized tile divides them."""
    if n <= cap:
        return n, n
    pad_n = ((n + cap - 1) // cap) * cap
    return cap, pad_n


# ----------------------------- op wrappers -----------------------------

def mha_block(xq, xkv, p, g, beta, causal, nhead, batch, sq, sk, use_pallas=True):
    """Fused attention sub-layer. xq:(B*sq,D) (also the residual), xkv:(B*sk,D)."""
    D = xq.shape[1]
    if not use_pallas:
        return _mha_block_ref(xq, xkv, p, g, beta, causal, nhead, batch, sq, sk)

    tq = _q_tile(sq)
    n_q = sq // tq
    qmap = lambda b, qi: (b * n_q + qi, 0)
    kvmap = lambda b, qi: (b, 0)

    in_specs = [
        pl.BlockSpec((tq, D), qmap),                      # q rows / residual
        pl.BlockSpec((sk, D), kvmap),                     # K/V source rows
        _const_spec((D, D)), _const_spec((1, D)),         # wq, bq
        _const_spec((D, 2 * D)), _const_spec((1, 2 * D)), # wkv, bkv (pre-packed)
        _const_spec((D, D)), _const_spec((1, D)),         # wo, bo
        _const_spec((1, D)), _const_spec((1, D)),         # LN gamma, beta
    ]
    vmem = _vmem_limit(n_double=2 * tq * D + sk * D,
                       n_single=4 * D * D + 8 * D + tq * D)

    return pl.pallas_call(
        functools.partial(_mha_block_kernel, nhead=nhead, causal=causal),
        out_shape=jax.ShapeDtypeStruct((batch * sq, D), xq.dtype),
        grid=(batch, n_q),
        in_specs=in_specs,
        out_specs=pl.BlockSpec((tq, D), qmap),
        scratch_shapes=[pltpu.VMEM((tq, D), jnp.float32)],
        compiler_params=pltpu.CompilerParams(
            dimension_semantics=("parallel", "parallel"),
            vmem_limit_bytes=vmem),
    )(xq, xkv, p["wq"], p["bq"], p["wkv"], p["bkv"], p["wo"], p["bo"], g, beta)


def ffn_block(x, w1, b1, w2, b2, g, beta, use_pallas=True):
    if not use_pallas:
        return _ffn_block_ref(x, w1, b1, w2, b2, g, beta)
    N, D = x.shape
    FF = w1.shape[1]
    bn, pn = _row_tiling(N)
    xp = jnp.pad(x, ((0, pn - N), (0, 0))) if pn != N else x
    out = pl.pallas_call(
        _ffn_block_kernel,
        out_shape=jax.ShapeDtypeStruct((pn, D), x.dtype),
        grid=(pn // bn,),
        in_specs=[
            pl.BlockSpec((bn, D), lambda i: (i, 0)),
            _const_spec((D, FF)), _const_spec((1, FF)),
            _const_spec((FF, D)), _const_spec((1, D)),
            _const_spec((1, D)), _const_spec((1, D)),
        ],
        out_specs=pl.BlockSpec((bn, D), lambda i: (i, 0)),
        compiler_params=pltpu.CompilerParams(
            dimension_semantics=("parallel",),
            vmem_limit_bytes=_vmem_limit(n_double=2 * bn * D + bn * FF,
                                         n_single=2 * D * FF + FF + 4 * D)),
    )(xp, w1, b1, w2, b2, g, beta)
    return out[:N] if pn != N else out


def layernorm(x, g, beta, use_pallas=True):
    if not use_pallas:
        return _layernorm_ref(x, g, beta)
    N, D = x.shape
    bn, pn = _row_tiling(N)
    xp = jnp.pad(x, ((0, pn - N), (0, 0))) if pn != N else x
    out = pl.pallas_call(
        _layernorm_kernel,
        out_shape=jax.ShapeDtypeStruct((pn, D), x.dtype),
        grid=(pn // bn,),
        in_specs=[pl.BlockSpec((bn, D), lambda i: (i, 0)),
                  _const_spec((1, D)), _const_spec((1, D))],
        out_specs=pl.BlockSpec((bn, D), lambda i: (i, 0)),
        compiler_params=pltpu.CompilerParams(
            dimension_semantics=("parallel",),
            vmem_limit_bytes=_vmem_limit(n_double=2 * bn * D, n_single=2 * D)),
    )(xp, g, beta)
    return out[:N] if pn != N else out


# ----------------------------- transformer forward -----------------------------

def encoder_decoder_forward(gt, x, params, nhead, use_pallas=True):
    """gt:(B,S_tgt,D), x:(B,S_src,D) -> (B,S_tgt,D). Post-norm transformer, ReLU FFN."""
    B, S_src, D = x.shape
    S_tgt = gt.shape[1]

    # ---- encoder stack (unmasked self-attn) ----
    mem = x.reshape(B * S_src, D)
    for p in params["encoder_layers"]:
        mem = mha_block(mem, mem, p["self_attn"], p["ln1_g"], p["ln1_b"], False,
                        nhead, B, S_src, S_src, use_pallas)
        mem = ffn_block(mem, p["w1"], p["b1"], p["w2"], p["b2"],
                        p["ln2_g"], p["ln2_b"], use_pallas)
    mem = layernorm(mem, params["enc_norm_g"], params["enc_norm_b"], use_pallas)

    # ---- decoder stack (causal self-attn, unmasked cross-attn) ----
    out = gt.reshape(B * S_tgt, D)
    for p in params["decoder_layers"]:
        out = mha_block(out, out, p["self_attn"], p["ln1_g"], p["ln1_b"], True,
                        nhead, B, S_tgt, S_tgt, use_pallas)
        out = mha_block(out, mem, p["cross_attn"], p["ln2_g"], p["ln2_b"], False,
                        nhead, B, S_tgt, S_src, use_pallas)
        out = ffn_block(out, p["w1"], p["b1"], p["w2"], p["b2"],
                        p["ln3_g"], p["ln3_b"], use_pallas)
    out = layernorm(out, params["dec_norm_g"], params["dec_norm_b"], use_pallas)
    return out.reshape(B, S_tgt, D)


# ----------------------------- deterministic parameter init -----------------------------

def init_params(key, d_model, nhead, num_encoder_layers, num_decoder_layers, dim_feedforward):
    del nhead  # head count only affects the forward split, not parameter shapes
    D, FF = d_model, dim_feedforward
    state = [key]

    def nk():
        state[0], sub = jax.random.split(state[0])
        return sub

    def w(shape, fan_in):
        return jax.random.normal(nk(), shape, jnp.float32) / math.sqrt(fan_in)

    def b(n):
        return 0.02 * jax.random.normal(nk(), (1, n), jnp.float32)

    def attn_p():
        # Stored pre-transposed (in, out) and KV pre-packed -> no per-forward
        # concat in the wrapper and no in-kernel weight transpose.
        return {"wq": w((D, D), D), "bq": b(D),
                "wkv": w((D, 2 * D), D), "bkv": b(2 * D),
                "wo": w((D, D), D), "bo": b(D)}

    def ln_p():
        return jnp.ones((1, D), jnp.float32), jnp.zeros((1, D), jnp.float32)

    def enc_layer():
        g1, b1_ = ln_p(); g2, b2_ = ln_p()
        return {"self_attn": attn_p(),
                "w1": w((D, FF), D), "b1": b(FF),
                "w2": w((FF, D), FF), "b2": b(D),
                "ln1_g": g1, "ln1_b": b1_, "ln2_g": g2, "ln2_b": b2_}

    def dec_layer():
        layer = enc_layer()
        g3, b3_ = ln_p()
        layer.update({"cross_attn": attn_p(), "ln3_g": g3, "ln3_b": b3_})
        return layer

    eg, eb = ln_p()
    dg, db = ln_p()
    return {"encoder_layers": [enc_layer() for _ in range(num_encoder_layers)],
            "decoder_layers": [dec_layer() for _ in range(num_decoder_layers)],
            "enc_norm_g": eg, "enc_norm_b": eb,
            "dec_norm_g": dg, "dec_norm_b": db}


# ----------------------------- main -----------------------------

if __name__ == "__main__":
    # Small hyper-params consistent with the module (d_model, nhead, layers, ffn).
    B, S, D, H, FF = 2, 8, 32, 4, 64
    N_LAYERS = 2

    key = jax.random.PRNGKey(0)
    kx, kg, kp = jax.random.split(key, 3)
    x = jax.random.normal(kx, (B, S, D), jnp.float32)    # src  (batch, seq, d_model)
    gt = jax.random.normal(kg, (B, S, D), jnp.float32)   # tgt  (batch, seq, d_model)
    params = init_params(kp, D, H, N_LAYERS, N_LAYERS, FF)

    fwd = jax.jit(functools.partial(encoder_decoder_forward, nhead=H, use_pallas=True))
    out = fwd(gt, x, params)
    jax.block_until_ready(out)

    # Pure-JAX reference (same math, exact softmax divide) for a correctness gate.
    ref = encoder_decoder_forward(gt, x, params, nhead=H, use_pallas=False)
    assert out.shape == (B, S, D), out.shape
    err = float(jnp.max(jnp.abs(out - ref)))
    # Tolerance accounts for the EUP approximate reciprocal in the softmax denom.
    assert jnp.allclose(out, ref, atol=5e-3, rtol=5e-3), err
    print("KERNEL_OK")
</pallas_src>

<mosaic_0001>
module attributes {stable_mosaic.version = 11 : i64} {
  func.func @_layernorm_kernel(%arg0: i32, %arg1: memref<16x32xf32, #tpu.memory_space<vmem>>, %arg2: memref<1x32xf32, #tpu.memory_space<vmem>>, %arg3: memref<1x32xf32, #tpu.memory_space<vmem>>, %arg4: memref<16x32xf32, #tpu.memory_space<vmem>>) attributes {dimension_semantics = [#tpu.dimension_semantics<parallel>], iteration_bounds = array<i64: 1>, scalar_prefetch = 0 : i64, scratch_operands = 0 : i64, tpu.core_type = #tpu.core_type<tc>, window_params = [{transform_indices = @transform_0, window_bounds = array<i64: 16, 32>}, {pipeline_mode = #tpu.pipeline_mode<synchronous>, transform_indices = @transform_1, window_bounds = array<i64: 1, 32>}, {pipeline_mode = #tpu.pipeline_mode<synchronous>, transform_indices = @transform_2, window_bounds = array<i64: 1, 32>}, {transform_indices = @transform_3, window_bounds = array<i64: 16, 32>}]} {
    %c0 = arith.constant 0 : index
    %c0_0 = arith.constant 0 : index
    %0 = vector.load %arg1[%c0, %c0_0] : memref<16x32xf32, #tpu.memory_space<vmem>>, vector<16x32xf32>
    %cst = arith.constant dense<0.000000e+00> : vector<16xf32>
    %1 = vector.multi_reduction <add>, %0, %cst [1] : vector<16x32xf32> to vector<16xf32>
    %2 = vector.shape_cast %1 : vector<16xf32> to vector<16x1xf32>
    %cst_1 = arith.constant 3.200000e+01 : f32
    %3 = vector.broadcast %cst_1 : f32 to vector<16x1xf32>
    %4 = arith.divf %2, %3 : vector<16x1xf32>
    %5 = vector.broadcast %4 : vector<16x1xf32> to vector<16x32xf32>
    %6 = arith.subf %0, %5 : vector<16x32xf32>
    %7 = arith.mulf %6, %6 : vector<16x32xf32>
    %cst_2 = arith.constant dense<0.000000e+00> : vector<16xf32>
    %8 = vector.multi_reduction <add>, %7, %cst_2 [1] : vector<16x32xf32> to vector<16xf32>
    %9 = vector.shape_cast %8 : vector<16xf32> to vector<16x1xf32>
    %cst_3 = arith.constant 3.200000e+01 : f32
    %10 = vector.broadcast %cst_3 : f32 to vector<16x1xf32>
    %11 = arith.divf %9, %10 : vector<16x1xf32>
    %cst_4 = arith.constant 9.99999974E-6 : f32
    %12 = vector.broadcast %cst_4 : f32 to vector<16x1xf32>
    %13 = arith.addf %11, %12 : vector<16x1xf32>
    %14 = math.rsqrt %13 : vector<16x1xf32>
    %15 = vector.broadcast %14 : vector<16x1xf32> to vector<16x32xf32>
    %16 = arith.mulf %6, %15 : vector<16x32xf32>
    %c0_5 = arith.constant 0 : index
    %c0_6 = arith.constant 0 : index
    %17 = vector.load %arg2[%c0_5, %c0_6] : memref<1x32xf32, #tpu.memory_space<vmem>>, vector<1x32xf32>
    %18 = vector.broadcast %17 : vector<1x32xf32> to vector<16x32xf32>
    %19 = arith.mulf %16, %18 : vector<16x32xf32>
    %c0_7 = arith.constant 0 : index
    %c0_8 = arith.constant 0 : index
    %20 = vector.load %arg3[%c0_7, %c0_8] : memref<1x32xf32, #tpu.memory_space<vmem>>, vector<1x32xf32>
    %21 = vector.broadcast %20 : vector<1x32xf32> to vector<16x32xf32>
    %22 = arith.addf %19, %21 : vector<16x32xf32>
    %c0_9 = arith.constant 0 : index
    %c0_10 = arith.constant 0 : index
    %23 = vector.load %arg4[%c0_9, %c0_10] : memref<16x32xf32, #tpu.memory_space<vmem>>, vector<16x32xf32>
    tpu.vector_store %arg4[%c0_9, %c0_10], %22 {strides = array<i32>} : memref<16x32xf32, #tpu.memory_space<vmem>>, vector<16x32xf32>,
    return
  }
  func.func @transform_0(%arg0: i32) -> (i32, i32) {
    %c0_i32 = arith.constant 0 : i32
    %c0_i32_0 = arith.constant 0 : i32
    return %arg0, %c0_i32 : i32, i32
  }
  func.func @transform_1(%arg0: i32) -> (i32, i32) {
    %c0_i32 = arith.constant 0 : i32
    %c0_i32_0 = arith.constant 0 : i32
    %c0_i32_1 = arith.constant 0 : i32
    return %c0_i32, %c0_i32_0 : i32, i32
  }
  func.func @transform_2(%arg0: i32) -> (i32, i32) {
    %c0_i32 = arith.constant 0 : i32
    %c0_i32_0 = arith.constant 0 : i32
    %c0_i32_1 = arith.constant 0 : i32
    return %c0_i32, %c0_i32_0 : i32, i32
  }
  func.func @transform_3(%arg0: i32) -> (i32, i32) {
    %c0_i32 = arith.constant 0 : i32
    %c0_i32_0 = arith.constant 0 : i32
    return %arg0, %c0_i32 : i32, i32
  }
}

module attributes {stable_mosaic.version = 11 : i64} {
  func.func @_ffn_block_kernel(%arg0: i32, %arg1: memref<16x32xf32, #tpu.memory_space<vmem>>, %arg2: memref<32x64xf32, #tpu.memory_space<vmem>>, %arg3: memref<1x64xf32, #tpu.memory_space<vmem>>, %arg4: memref<64x32xf32, #tpu.memory_space<vmem>>, %arg5: memref<1x32xf32, #tpu.memory_space<vmem>>, %arg6: memref<1x32xf32, #tpu.memory_space<vmem>>, %arg7: memref<1x32xf32, #tpu.memory_space<vmem>>, %arg8: memref<16x32xf32, #tpu.memory_space<vmem>>) attributes {dimension_semantics = [#tpu.dimension_semantics<parallel>], iteration_bounds = array<i64: 1>, scalar_prefetch = 0 : i64, scratch_operands = 0 : i64, tpu.core_type = #tpu.core_type<tc>, window_params = [{transform_indices = @transform_0, window_bounds = array<i64: 16, 32>}, {pipeline_mode = #tpu.pipeline_mode<synchronous>, transform_indices = @transform_1, window_bounds = array<i64: 32, 64>}, {pipeline_mode = #tpu.pipeline_mode<synchronous>, transform_indices = @transform_2, window_bounds = array<i64: 1, 64>}, {pipeline_mode = #tpu.pipeline_mode<synchronous>, transform_indices = @transform_3, window_bounds = array<i64: 64, 32>}, {pipeline_mode = #tpu.pipeline_mode<synchronous>, transform_indices = @transform_4, window_bounds = array<i64: 1, 32>}, {pipeline_mode = #tpu.pipeline_mode<synchronous>, transform_indices = @transform_5, window_bounds = array<i64: 1, 32>}, {pipeline_mode = #tpu.pipeline_mode<synchronous>, transform_indices = @transform_6, window_bounds = array<i64: 1, 32>}, {transform_indices = @transform_7, window_bounds = array<i64: 16, 32>}]} {
    %c0 = arith.constant 0 : index
    %c0_0 = arith.constant 0 : index
    %0 = vector.load %arg1[%c0, %c0_0] : memref<16x32xf32, #tpu.memory_space<vmem>>, vector<16x32xf32>
    %c0_1 = arith.constant 0 : index
    %c0_2 = arith.constant 0 : index
    %1 = vector.load %arg2[%c0_1, %c0_2] : memref<32x64xf32, #tpu.memory_space<vmem>>, vector<32x64xf32>
    %cst = arith.constant dense<0.000000e+00> : vector<16x64xf32>
    %2 = tpu.matmul %0, %1, %cst {dimension_numbers = #tpu.dot_dimension_numbers<[1], [0], [0], [1], [0, 0, 1, 1], [], []>} : vector<16x32xf32>, vector<32x64xf32>, vector<16x64xf32> -> vector<16x64xf32>
    %c0_3 = arith.constant 0 : index
    %c0_4 = arith.constant 0 : index
    %3 = vector.load %arg3[%c0_3, %c0_4] : memref<1x64xf32, #tpu.memory_space<vmem>>, vector<1x64xf32>
    %4 = vector.broadcast %3 : vector<1x64xf32> to vector<16x64xf32>
    %5 = arith.addf %2, %4 : vector<16x64xf32>
    %cst_5 = arith.constant 0.000000e+00 : f32
    %6 = vector.broadcast %cst_5 : f32 to vector<16x64xf32>
    %7 = arith.maximumf %5, %6 : vector<16x64xf32>
    %c0_6 = arith.constant 0 : index
    %c0_7 = arith.constant 0 : index
    %8 = vector.load %arg4[%c0_6, %c0_7] : memref<64x32xf32, #tpu.memory_space<vmem>>, vector<64x32xf32>
    %cst_8 = arith.constant dense<0.000000e+00> : vector<16x32xf32>
    %9 = tpu.matmul %7, %8, %cst_8 {dimension_numbers = #tpu.dot_dimension_numbers<[1], [0], [0], [1], [0, 0, 1, 1], [], []>} : vector<16x64xf32>, vector<64x32xf32>, vector<16x32xf32> -> vector<16x32xf32>
    %c0_9 = arith.constant 0 : index
    %c0_10 = arith.constant 0 : index
    %10 = vector.load %arg5[%c0_9, %c0_10] : memref<1x32xf32, #tpu.memory_space<vmem>>, vector<1x32xf32>
    %11 = vector.broadcast %10 : vector<1x32xf32> to vector<16x32xf32>
    %12 = arith.addf %9, %11 : vector<16x32xf32>
    %13 = arith.addf %12, %0 : vector<16x32xf32>
    %cst_11 = arith.constant dense<0.000000e+00> : vector<16xf32>
    %14 = vector.multi_reduction <add>, %13, %cst_11 [1] : vector<16x32xf32> to vector<16xf32>
    %15 = vector.shape_cast %14 : vector<16xf32> to vector<16x1xf32>
    %cst_12 = arith.constant 3.200000e+01 : f32
    %16 = vector.broadcast %cst_12 : f32 to vector<16x1xf32>
    %17 = arith.divf %15, %16 : vector<16x1xf32>
    %18 = vector.broadcast %17 : vector<16x1xf32> to vector<16x32xf32>
    %19 = arith.subf %13, %18 : vector<16x32xf32>
    %20 = arith.mulf %19, %19 : vector<16x32xf32>
    %cst_13 = arith.constant dense<0.000000e+00> : vector<16xf32>
    %21 = vector.multi_reduction <add>, %20, %cst_13 [1] : vector<16x32xf32> to vector<16xf32>
    %22 = vector.shape_cast %21 : vector<16xf32> to vector<16x1xf32>
    %cst_14 = arith.constant 3.200000e+01 : f32
    %23 = vector.broadcast %cst_14 : f32 to vector<16x1xf32>
    %24 = arith.divf %22, %23 : vector<16x1xf32>
    %cst_15 = arith.constant 9.99999974E-6 : f32
    %25 = vector.broadcast %cst_15 : f32 to vector<16x1xf32>
    %26 = arith.addf %24, %25 : vector<16x1xf32>
    %27 = math.rsqrt %26 : vector<16x1xf32>
    %28 = vector.broadcast %27 : vector<16x1xf32> to vector<16x32xf32>
    %29 = arith.mulf %19, %28 : vector<16x32xf32>
    %c0_16 = arith.constant 0 : index
    %c0_17 = arith.constant 0 : index
    %30 = vector.load %arg6[%c0_16, %c0_17] : memref<1x32xf32, #tpu.memory_space<vmem>>, vector<1x32xf32>
    %31 = vector.broadcast %30 : vector<1x32xf32> to vector<16x32xf32>
    %32 = arith.mulf %29, %31 : vector<16x32xf32>
    %c0_18 = arith.constant 0 : index
    %c0_19 = arith.constant 0 : index
    %33 = vector.load %arg7[%c0_18, %c0_19] : memref<1x32xf32, #tpu.memory_space<vmem>>, vector<1x32xf32>
    %34 = vector.broadcast %33 : vector<1x32xf32> to vector<16x32xf32>
    %35 = arith.addf %32, %34 : vector<16x32xf32>
    %c0_20 = arith.constant 0 : index
    %c0_21 = arith.constant 0 : index
    %36 = vector.load %arg8[%c0_20, %c0_21] : memref<16x32xf32, #tpu.memory_space<vmem>>, vector<16x32xf32>
    tpu.vector_store %arg8[%c0_20, %c0_21], %35 {strides = array<i32>} : memref<16x32xf32, #tpu.memory_space<vmem>>, vector<16x32xf32>,
    return
  }
  func.func @transform_0(%arg0: i32) -> (i32, i32) {
    %c0_i32 = arith.constant 0 : i32
    %c0_i32_0 = arith.constant 0 : i32
    return %arg0, %c0_i32 : i32, i32
  }
  func.func @transform_1(%arg0: i32) -> (i32, i32) {
    %c0_i32 = arith.constant 0 : i32
    %c0_i32_0 = arith.constant 0 : i32
    %c0_i32_1 = arith.constant 0 : i32
    return %c0_i32, %c0_i32_0 : i32, i32
  }
  func.func @transform_2(%arg0: i32) -> (i32, i32) {
    %c0_i32 = arith.constant 0 : i32
    %c0_i32_0 = arith.constant 0 : i32
    %c0_i32_1 = arith.constant 0 : i32
    return %c0_i32, %c0_i32_0 : i32, i32
  }
  func.func @transform_3(%arg0: i32) -> (i32, i32) {
    %c0_i32 = arith.constant 0 : i32
    %c0_i32_0 = arith.constant 0 : i32
    %c0_i32_1 = arith.constant 0 : i32
    return %c0_i32, %c0_i32_0 : i32, i32
  }
  func.func @transform_4(%arg0: i32) -> (i32, i32) {
    %c0_i32 = arith.constant 0 : i32
    %c0_i32_0 = arith.constant 0 : i32
    %c0_i32_1 = arith.constant 0 : i32
    return %c0_i32, %c0_i32_0 : i32, i32
  }
  func.func @transform_5(%arg0: i32) -> (i32, i32) {
    %c0_i32 = arith.constant 0 : i32
    %c0_i32_0 = arith.constant 0 : i32
    %c0_i32_1 = arith.constant 0 : i32
    return %c0_i32, %c0_i32_0 : i32, i32
  }
  func.func @transform_6(%arg0: i32) -> (i32, i32) {
    %c0_i32 = arith.constant 0 : i32
    %c0_i32_0 = arith.constant 0 : i32
    %c0_i32_1 = arith.constant 0 : i32
    return %c0_i32, %c0_i32_0 : i32, i32
  }
  func.func @transform_7(%arg0: i32) -> (i32, i32) {
    %c0_i32 = arith.constant 0 : i32
    %c0_i32_0 = arith.constant 0 : i32
    return %arg0, %c0_i32 : i32, i32
  }
}

module attributes {stable_mosaic.version = 11 : i64} {
  func.func @_mha_block_kernel(%arg0: i32, %arg1: i32, %arg2: memref<8x32xf32, #tpu.memory_space<vmem>>, %arg3: memref<8x32xf32, #tpu.memory_space<vmem>>, %arg4: memref<32x32xf32, #tpu.memory_space<vmem>>, %arg5: memref<1x32xf32, #tpu.memory_space<vmem>>, %arg6: memref<32x64xf32, #tpu.memory_space<vmem>>, %arg7: memref<1x64xf32, #tpu.memory_space<vmem>>, %arg8: memref<32x32xf32, #tpu.memory_space<vmem>>, %arg9: memref<1x32xf32, #tpu.memory_space<vmem>>, %arg10: memref<1x32xf32, #tpu.memory_space<vmem>>, %arg11: memref<1x32xf32, #tpu.memory_space<vmem>>, %arg12: memref<8x32xf32, #tpu.memory_space<vmem>>, %arg13: memref<8x32xf32, #tpu.memory_space<vmem>>) attributes {dimension_semantics = [#tpu.dimension_semantics<parallel>, #tpu.dimension_semantics<parallel>], iteration_bounds = array<i64: 2, 1>, scalar_prefetch = 0 : i64, scratch_operands = 1 : i64, tpu.core_type = #tpu.core_type<tc>, window_params = [{transform_indices = @transform_0, window_bounds = array<i64: 8, 32>}, {transform_indices = @transform_1, window_bounds = array<i64: 8, 32>}, {pipeline_mode = #tpu.pipeline_mode<synchronous>, transform_indices = @transform_2, window_bounds = array<i64: 32, 32>}, {pipeline_mode = #tpu.pipeline_mode<synchronous>, transform_indices = @transform_3, window_bounds = array<i64: 1, 32>}, {pipeline_mode = #tpu.pipeline_mode<synchronous>, transform_indices = @transform_4, window_bounds = array<i64: 32, 64>}, {pipeline_mode = #tpu.pipeline_mode<synchronous>, transform_indices = @transform_5, window_bounds = array<i64: 1, 64>}, {pipeline_mode = #tpu.pipeline_mode<synchronous>, transform_indices = @transform_6, window_bounds = array<i64: 32, 32>}, {pipeline_mode = #tpu.pipeline_mode<synchronous>, transform_indices = @transform_7, window_bounds = array<i64: 1, 32>}, {pipeline_mode = #tpu.pipeline_mode<synchronous>, transform_indices = @transform_8, window_bounds = array<i64: 1, 32>}, {pipeline_mode = #tpu.pipeline_mode<synchronous>, transform_indices = @transform_9, window_bounds = array<i64: 1, 32>}, {transform_indices = @transform_10, window_bounds = array<i64: 8, 32>}]} {
    %c0 = arith.constant 0 : index
    %c0_0 = arith.constant 0 : index
    %0 = vector.load %arg2[%c0, %c0_0] : memref<8x32xf32, #tpu.memory_space<vmem>>, vector<8x32xf32>
    %c0_1 = arith.constant 0 : index
    %c0_2 = arith.constant 0 : index
    %1 = vector.load %arg4[%c0_1, %c0_2] : memref<32x32xf32, #tpu.memory_space<vmem>>, vector<32x32xf32>
    %cst = arith.constant dense<0.000000e+00> : vector<8x32xf32>
    %2 = tpu.matmul %0, %1, %cst {dimension_numbers = #tpu.dot_dimension_numbers<[1], [0], [0], [1], [0, 0, 1, 1], [], []>} : vector<8x32xf32>, vector<32x32xf32>, vector<8x32xf32> -> vector<8x32xf32>
    %c0_3 = arith.constant 0 : index
    %c0_4 = arith.constant 0 : index
    %3 = vector.load %arg5[%c0_3, %c0_4] : memref<1x32xf32, #tpu.memory_space<vmem>>, vector<1x32xf32>
    %4 = vector.broadcast %3 : vector<1x32xf32> to vector<8x32xf32>
    %5 = arith.addf %2, %4 : vector<8x32xf32>
    %cst_5 = arith.constant 0.353553385 : f32
    %6 = vector.broadcast %cst_5 : f32 to vector<8x32xf32>
    %7 = arith.mulf %5, %6 : vector<8x32xf32>
    %c0_6 = arith.constant 0 : index
    %c0_7 = arith.constant 0 : index
    %8 = vector.load %arg3[%c0_6, %c0_7] : memref<8x32xf32, #tpu.memory_space<vmem>>, vector<8x32xf32>
    %c0_8 = arith.constant 0 : index
    %c0_9 = arith.constant 0 : index
    %9 = vector.load %arg6[%c0_8, %c0_9] : memref<32x64xf32, #tpu.memory_space<vmem>>, vector<32x64xf32>
    %cst_10 = arith.constant dense<0.000000e+00> : vector<8x64xf32>
    %10 = tpu.matmul %8, %9, %cst_10 {dimension_numbers = #tpu.dot_dimension_numbers<[1], [0], [0], [1], [0, 0, 1, 1], [], []>} : vector<8x32xf32>, vector<32x64xf32>, vector<8x64xf32> -> vector<8x64xf32>
    %c0_11 = arith.constant 0 : index
    %c0_12 = arith.constant 0 : index
    %11 = vector.load %arg7[%c0_11, %c0_12] : memref<1x64xf32, #tpu.memory_space<vmem>>, vector<1x64xf32>
    %12 = vector.broadcast %11 : vector<1x64xf32> to vector<8x64xf32>
    %13 = arith.addf %10, %12 : vector<8x64xf32>
    %14 = vector.extract_strided_slice %13 {offsets = [0, 0], sizes = [8, 32], strides = [1, 1]} : vector<8x64xf32> to vector<8x32xf32>
    %15 = vector.extract_strided_slice %13 {offsets = [0, 32], sizes = [8, 32], strides = [1, 1]} : vector<8x64xf32> to vector<8x32xf32>
    %c0_13 = arith.constant 0 : index
    %c0_14 = arith.constant 0 : index
    %16 = vector.load %arg8[%c0_13, %c0_14] : memref<32x32xf32, #tpu.memory_space<vmem>>, vector<32x32xf32>
    %c0_15 = arith.constant 0 : index
    %c0_16 = arith.constant 0 : index
    %17 = vector.load %arg9[%c0_15, %c0_16] : memref<1x32xf32, #tpu.memory_space<vmem>>, vector<1x32xf32>
    %18 = vector.broadcast %17 : vector<1x32xf32> to vector<8x32xf32>
    %19 = arith.addf %0, %18 : vector<8x32xf32>
    %c0_17 = arith.constant 0 : index
    %c0_18 = arith.constant 0 : index
    %20 = vector.load %arg13[%c0_17, %c0_18] : memref<8x32xf32, #tpu.memory_space<vmem>>, vector<8x32xf32>
    tpu.vector_store %arg13[%c0_17, %c0_18], %19 {strides = array<i32>} : memref<8x32xf32, #tpu.memory_space<vmem>>, vector<8x32xf32>,
    %21 = vector.extract_strided_slice %7 {offsets = [0, 0], sizes = [8, 8], strides = [1, 1]} : vector<8x32xf32> to vector<8x8xf32>
    %22 = vector.extract_strided_slice %14 {offsets = [0, 0], sizes = [8, 8], strides = [1, 1]} : vector<8x32xf32> to vector<8x8xf32>
    %cst_19 = arith.constant dense<0.000000e+00> : vector<8x8xf32>
    %23 = tpu.matmul %21, %22, %cst_19 {dimension_numbers = #tpu.dot_dimension_numbers<[1], [1], [0], [0], [0, 0, 1, 0], [], []>} : vector<8x8xf32>, vector<8x8xf32>, vector<8x8xf32> -> vector<8x8xf32>
    %cst_20 = arith.constant dense<0xFF800000> : vector<8xf32>
    %24 = vector.multi_reduction <maximumf>, %23, %cst_20 [1] : vector<8x8xf32> to vector<8xf32>
    %25 = vector.shape_cast %24 : vector<8xf32> to vector<8x1xf32>
    %26 = vector.broadcast %25 : vector<8x1xf32> to vector<8x8xf32>
    %27 = arith.subf %23, %26 : vector<8x8xf32>
    %28 = math.exp %27 : vector<8x8xf32>
    %cst_21 = arith.constant dense<0.000000e+00> : vector<8xf32>
    %29 = vector.multi_reduction <add>, %28, %cst_21 [1] : vector<8x8xf32> to vector<8xf32>
    %30 = vector.shape_cast %29 : vector<8xf32> to vector<8x1xf32>
    %31 = tpu.reciprocal %30 {approx = true} : vector<8x1xf32> -> vector<8x1xf32>
    %32 = vector.extract_strided_slice %15 {offsets = [0, 0], sizes = [8, 8], strides = [1, 1]} : vector<8x32xf32> to vector<8x8xf32>
    %cst_22 = arith.constant dense<0.000000e+00> : vector<8x8xf32>
    %33 = tpu.matmul %28, %32, %cst_22 {dimension_numbers = #tpu.dot_dimension_numbers<[1], [0], [0], [1], [0, 0, 1, 1], [], []>} : vector<8x8xf32>, vector<8x8xf32>, vector<8x8xf32> -> vector<8x8xf32>
    %34 = vector.broadcast %31 : vector<8x1xf32> to vector<8x8xf32>
    %35 = arith.mulf %33, %34 : vector<8x8xf32>
    %c0_23 = arith.constant 0 : index
    %c0_24 = arith.constant 0 : index
    %36 = vector.load %arg13[%c0_23, %c0_24] : memref<8x32xf32, #tpu.memory_space<vmem>>, vector<8x32xf32>
    %37 = vector.extract_strided_slice %16 {offsets = [0, 0], sizes = [8, 32], strides = [1, 1]} : vector<32x32xf32> to vector<8x32xf32>
    %cst_25 = arith.constant dense<0.000000e+00> : vector<8x32xf32>
    %38 = tpu.matmul %35, %37, %cst_25 {dimension_numbers = #tpu.dot_dimension_numbers<[1], [0], [0], [1], [0, 0, 1, 1], [], []>} : vector<8x8xf32>, vector<8x32xf32>, vector<8x32xf32> -> vector<8x32xf32>
    %39 = arith.addf %36, %38 : vector<8x32xf32>
    %c0_26 = arith.constant 0 : index
    %c0_27 = arith.constant 0 : index
    %40 = vector.load %arg13[%c0_26, %c0_27] : memref<8x32xf32, #tpu.memory_space<vmem>>, vector<8x32xf32>
    tpu.vector_store %arg13[%c0_26, %c0_27], %39 {strides = array<i32>} : memref<8x32xf32, #tpu.memory_space<vmem>>, vector<8x32xf32>,
    %41 = vector.extract_strided_slice %7 {offsets = [0, 8], sizes = [8, 8], strides = [1, 1]} : vector<8x32xf32> to vector<8x8xf32>
    %42 = vector.extract_strided_slice %14 {offsets = [0, 8], sizes = [8, 8], strides = [1, 1]} : vector<8x32xf32> to vector<8x8xf32>
    %cst_28 = arith.constant dense<0.000000e+00> : vector<8x8xf32>
    %43 = tpu.matmul %41, %42, %cst_28 {dimension_numbers = #tpu.dot_dimension_numbers<[1], [1], [0], [0], [0, 0, 1, 0], [], []>} : vector<8x8xf32>, vector<8x8xf32>, vector<8x8xf32> -> vector<8x8xf32>
    %cst_29 = arith.constant dense<0xFF800000> : vector<8xf32>
    %44 = vector.multi_reduction <maximumf>, %43, %cst_29 [1] : vector<8x8xf32> to vector<8xf32>
    %45 = vector.shape_cast %44 : vector<8xf32> to vector<8x1xf32>
    %46 = vector.broadcast %45 : vector<8x1xf32> to vector<8x8xf32>
    %47 = arith.subf %43, %46 : vector<8x8xf32>
    %48 = math.exp %47 : vector<8x8xf32>
    %cst_30 = arith.constant dense<0.000000e+00> : vector<8xf32>
    %49 = vector.multi_reduction <add>, %48, %cst_30 [1] : vector<8x8xf32> to vector<8xf32>
    %50 = vector.shape_cast %49 : vector<8xf32> to vector<8x1xf32>
    %51 = tpu.reciprocal %50 {approx = true} : vector<8x1xf32> -> vector<8x1xf32>
    %52 = vector.extract_strided_slice %15 {offsets = [0, 8], sizes = [8, 8], strides = [1, 1]} : vector<8x32xf32> to vector<8x8xf32>
    %cst_31 = arith.constant dense<0.000000e+00> : vector<8x8xf32>
    %53 = tpu.matmul %48, %52, %cst_31 {dimension_numbers = #tpu.dot_dimension_numbers<[1], [0], [0], [1], [0, 0, 1, 1], [], []>} : vector<8x8xf32>, vector<8x8xf32>, vector<8x8xf32> -> vector<8x8xf32>
    %54 = vector.broadcast %51 : vector<8x1xf32> to vector<8x8xf32>
    %55 = arith.mulf %53, %54 : vector<8x8xf32>
    %c0_32 = arith.constant 0 : index
    %c0_33 = arith.constant 0 : index
    %56 = vector.load %arg13[%c0_32, %c0_33] : memref<8x32xf32, #tpu.memory_space<vmem>>, vector<8x32xf32>
    %57 = vector.extract_strided_slice %16 {offsets = [8, 0], sizes = [8, 32], strides = [1, 1]} : vector<32x32xf32> to vector<8x32xf32>
    %cst_34 = arith.constant dense<0.000000e+00> : vector<8x32xf32>
    %58 = tpu.matmul %55, %57, %cst_34 {dimension_numbers = #tpu.dot_dimension_numbers<[1], [0], [0], [1], [0, 0, 1, 1], [], []>} : vector<8x8xf32>, vector<8x32xf32>, vector<8x32xf32> -> vector<8x32xf32>
    %59 = arith.addf %56, %58 : vector<8x32xf32>
    %c0_35 = arith.constant 0 : index
    %c0_36 = arith.constant 0 : index
    %60 = vector.load %arg13[%c0_35, %c0_36] : memref<8x32xf32, #tpu.memory_space<vmem>>, vector<8x32xf32>
    tpu.vector_store %arg13[%c0_35, %c0_36], %59 {strides = array<i32>} : memref<8x32xf32, #tpu.memory_space<vmem>>, vector<8x32xf32>,
    %61 = vector.extract_strided_slice %7 {offsets = [0, 16], sizes = [8, 8], strides = [1, 1]} : vector<8x32xf32> to vector<8x8xf32>
    %62 = vector.extract_strided_slice %14 {offsets = [0, 16], sizes = [8, 8], strides = [1, 1]} : vector<8x32xf32> to vector<8x8xf32>
    %cst_37 = arith.constant dense<0.000000e+00> : vector<8x8xf32>
    %63 = tpu.matmul %61, %62, %cst_37 {dimension_numbers = #tpu.dot_dimension_numbers<[1], [1], [0], [0], [0, 0, 1, 0], [], []>} : vector<8x8xf32>, vector<8x8xf32>, vector<8x8xf32> -> vector<8x8xf32>
    %cst_38 = arith.constant dense<0xFF800000> : vector<8xf32>
    %64 = vector.multi_reduction <maximumf>, %63, %cst_38 [1] : vector<8x8xf32> to vector<8xf32>
    %65 = vector.shape_cast %64 : vector<8xf32> to vector<8x1xf32>
    %66 = vector.broadcast %65 : vector<8x1xf32> to vector<8x8xf32>
    %67 = arith.subf %63, %66 : vector<8x8xf32>
    %68 = math.exp %67 : vector<8x8xf32>
    %cst_39 = arith.constant dense<0.000000e+00> : vector<8xf32>
    %69 = vector.multi_reduction <add>, %68, %cst_39 [1] : vector<8x8xf32> to vector<8xf32>
    %70 = vector.shape_cast %69 : vector<8xf32> to vector<8x1xf32>
    %71 = tpu.reciprocal %70 {approx = true} : vector<8x1xf32> -> vector<8x1xf32>
    %72 = vector.extract_strided_slice %15 {offsets = [0, 16], sizes = [8, 8], strides = [1, 1]} : vector<8x32xf32> to vector<8x8xf32>
    %cst_40 = arith.constant dense<0.000000e+00> : vector<8x8xf32>
    %73 = tpu.matmul %68, %72, %cst_40 {dimension_numbers = #tpu.dot_dimension_numbers<[1], [0], [0], [1], [0, 0, 1, 1], [], []>} : vector<8x8xf32>, vector<8x8xf32>, vector<8x8xf32> -> vector<8x8xf32>
    %74 = vector.broadcast %71 : vector<8x1xf32> to vector<8x8xf32>
    %75 = arith.mulf %73, %74 : vector<8x8xf32>
    %c0_41 = arith.constant 0 : index
    %c0_42 = arith.constant 0 : index
    %76 = vector.load %arg13[%c0_41, %c0_42] : memref<8x32xf32, #tpu.memory_space<vmem>>, vector<8x32xf32>
    %77 = vector.extract_strided_slice %16 {offsets = [16, 0], sizes = [8, 32], strides = [1, 1]} : vector<32x32xf32> to vector<8x32xf32>
    %cst_43 = arith.constant dense<0.000000e+00> : vector<8x32xf32>
    %78 = tpu.matmul %75, %77, %cst_43 {dimension_numbers = #tpu.dot_dimension_numbers<[1], [0], [0], [1], [0, 0, 1, 1], [], []>} : vector<8x8xf32>, vector<8x32xf32>, vector<8x32xf32> -> vector<8x32xf32>
    %79 = arith.addf %76, %78 : vector<8x32xf32>
    %c0_44 = arith.constant 0 : index
    %c0_45 = arith.constant 0 : index
    %80 = vector.load %arg13[%c0_44, %c0_45] : memref<8x32xf32, #tpu.memory_space<vmem>>, vector<8x32xf32>
    tpu.vector_store %arg13[%c0_44, %c0_45], %79 {strides = array<i32>} : memref<8x32xf32, #tpu.memory_space<vmem>>, vector<8x32xf32>,
    %81 = vector.extract_strided_slice %7 {offsets = [0, 24], sizes = [8, 8], strides = [1, 1]} : vector<8x32xf32> to vector<8x8xf32>
    %82 = vector.extract_strided_slice %14 {offsets = [0, 24], sizes = [8, 8], strides = [1, 1]} : vector<8x32xf32> to vector<8x8xf32>
    %cst_46 = arith.constant dense<0.000000e+00> : vector<8x8xf32>
    %83 = tpu.matmul %81, %82, %cst_46 {dimension_numbers = #tpu.dot_dimension_numbers<[1], [1], [0], [0], [0, 0, 1, 0], [], []>} : vector<8x8xf32>, vector<8x8xf32>, vector<8x8xf32> -> vector<8x8xf32>
    %cst_47 = arith.constant dense<0xFF800000> : vector<8xf32>
    %84 = vector.multi_reduction <maximumf>, %83, %cst_47 [1] : vector<8x8xf32> to vector<8xf32>
    %85 = vector.shape_cast %84 : vector<8xf32> to vector<8x1xf32>
    %86 = vector.broadcast %85 : vector<8x1xf32> to vector<8x8xf32>
    %87 = arith.subf %83, %86 : vector<8x8xf32>
    %88 = math.exp %87 : vector<8x8xf32>
    %cst_48 = arith.constant dense<0.000000e+00> : vector<8xf32>
    %89 = vector.multi_reduction <add>, %88, %cst_48 [1] : vector<8x8xf32> to vector<8xf32>
    %90 = vector.shape_cast %89 : vector<8xf32> to vector<8x1xf32>
    %91 = tpu.reciprocal %90 {approx = true} : vector<8x1xf32> -> vector<8x1xf32>
    %92 = vector.extract_strided_slice %15 {offsets = [0, 24], sizes = [8, 8], strides = [1, 1]} : vector<8x32xf32> to vector<8x8xf32>
    %cst_49 = arith.constant dense<0.000000e+00> : vector<8x8xf32>
    %93 = tpu.matmul %88, %92, %cst_49 {dimension_numbers = #tpu.dot_dimension_numbers<[1], [0], [0], [1], [0, 0, 1, 1], [], []>} : vector<8x8xf32>, vector<8x8xf32>, vector<8x8xf32> -> vector<8x8xf32>
    %94 = vector.broadcast %91 : vector<8x1xf32> to vector<8x8xf32>
    %95 = arith.mulf %93, %94 : vector<8x8xf32>
    %c0_50 = arith.constant 0 : index
    %c0_51 = arith.constant 0 : index
    %96 = vector.load %arg13[%c0_50, %c0_51] : memref<8x32xf32, #tpu.memory_space<vmem>>, vector<8x32xf32>
    %97 = vector.extract_strided_slice %16 {offsets = [24, 0], sizes = [8, 32], strides = [1, 1]} : vector<32x32xf32> to vector<8x32xf32>
    %cst_52 = arith.constant dense<0.000000e+00> : vector<8x32xf32>
    %98 = tpu.matmul %95, %97, %cst_52 {dimension_numbers = #tpu.dot_dimension_numbers<[1], [0], [0], [1], [0, 0, 1, 1], [], []>} : vector<8x8xf32>, vector<8x32xf32>, vector<8x32xf32> -> vector<8x32xf32>
    %99 = arith.addf %96, %98 : vector<8x32xf32>
    %c0_53 = arith.constant 0 : index
    %c0_54 = arith.constant 0 : index
    %100 = vector.load %arg13[%c0_53, %c0_54] : memref<8x32xf32, #tpu.memory_space<vmem>>, vector<8x32xf32>
    tpu.vector_store %arg13[%c0_53, %c0_54], %99 {strides = array<i32>} : memref<8x32xf32, #tpu.memory_space<vmem>>, vector<8x32xf32>,
    %c0_55 = arith.constant 0 : index
    %c0_56 = arith.constant 0 : index
    %101 = vector.load %arg13[%c0_55, %c0_56] : memref<8x32xf32, #tpu.memory_space<vmem>>, vector<8x32xf32>
    %cst_57 = arith.constant dense<0.000000e+00> : vector<8xf32>
    %102 = vector.multi_reduction <add>, %101, %cst_57 [1] : vector<8x32xf32> to vector<8xf32>
    %103 = vector.shape_cast %102 : vector<8xf32> to vector<8x1xf32>
    %cst_58 = arith.constant 3.200000e+01 : f32
    %104 = vector.broadcast %cst_58 : f32 to vector<8x1xf32>
    %105 = arith.divf %103, %104 : vector<8x1xf32>
    %106 = vector.broadcast %105 : vector<8x1xf32> to vector<8x32xf32>
    %107 = arith.subf %101, %106 : vector<8x32xf32>
    %108 = arith.mulf %107, %107 : vector<8x32xf32>
    %cst_59 = arith.constant dense<0.000000e+00> : vector<8xf32>
    %109 = vector.multi_reduction <add>, %108, %cst_59 [1] : vector<8x32xf32> to vector<8xf32>
    %110 = vector.shape_cast %109 : vector<8xf32> to vector<8x1xf32>
    %cst_60 = arith.constant 3.200000e+01 : f32
    %111 = vector.broadcast %cst_60 : f32 to vector<8x1xf32>
    %112 = arith.divf %110, %111 : vector<8x1xf32>
    %cst_61 = arith.constant 9.99999974E-6 : f32
    %113 = vector.broadcast %cst_61 : f32 to vector<8x1xf32>
    %114 = arith.addf %112, %113 : vector<8x1xf32>
    %115 = math.rsqrt %114 : vector<8x1xf32>
    %116 = vector.broadcast %115 : vector<8x1xf32> to vector<8x32xf32>
    %117 = arith.mulf %107, %116 : vector<8x32xf32>
    %c0_62 = arith.constant 0 : index
    %c0_63 = arith.constant 0 : index
    %118 = vector.load %arg10[%c0_62, %c0_63] : memref<1x32xf32, #tpu.memory_space<vmem>>, vector<1x32xf32>
    %119 = vector.broadcast %118 : vector<1x32xf32> to vector<8x32xf32>
    %120 = arith.mulf %117, %119 : vector<8x32xf32>
    %c0_64 = arith.constant 0 : index
    %c0_65 = arith.constant 0 : index
    %121 = vector.load %arg11[%c0_64, %c0_65] : memref<1x32xf32, #tpu.memory_space<vmem>>, vector<1x32xf32>
    %122 = vector.broadcast %121 : vector<1x32xf32> to vector<8x32xf32>
    %123 = arith.addf %120, %122 : vector<8x32xf32>
    %c0_66 = arith.constant 0 : index
    %c0_67 = arith.constant 0 : index
    %124 = vector.load %arg12[%c0_66, %c0_67] : memref<8x32xf32, #tpu.memory_space<vmem>>, vector<8x32xf32>
    tpu.vector_store %arg12[%c0_66, %c0_67], %123 {strides = array<i32>} : memref<8x32xf32, #tpu.memory_space<vmem>>, vector<8x32xf32>,
    return
  }
  func.func @transform_0(%arg0: i32, %arg1: i32) -> (i32, i32) {
    %c1_i32 = arith.constant 1 : i32
    %0 = arith.muli %arg0, %c1_i32 : i32
    %1 = arith.addi %0, %arg1 : i32
    %c0_i32 = arith.constant 0 : i32
    %c0_i32_0 = arith.constant 0 : i32
    return %1, %c0_i32 : i32, i32
  }
  func.func @transform_1(%arg0: i32, %arg1: i32) -> (i32, i32) {
    %c0_i32 = arith.constant 0 : i32
    %c0_i32_0 = arith.constant 0 : i32
    return %arg0, %c0_i32 : i32, i32
  }
  func.func @transform_2(%arg0: i32, %arg1: i32) -> (i32, i32) {
    %c0_i32 = arith.constant 0 : i32
    %c0_i32_0 = arith.constant 0 : i32
    %c0_i32_1 = arith.constant 0 : i32
    return %c0_i32, %c0_i32_0 : i32, i32
  }
  func.func @transform_3(%arg0: i32, %arg1: i32) -> (i32, i32) {
    %c0_i32 = arith.constant 0 : i32
    %c0_i32_0 = arith.constant 0 : i32
    %c0_i32_1 = arith.constant 0 : i32
    return %c0_i32, %c0_i32_0 : i32, i32
  }
  func.func @transform_4(%arg0: i32, %arg1: i32) -> (i32, i32) {
    %c0_i32 = arith.constant 0 : i32
    %c0_i32_0 = arith.constant 0 : i32
    %c0_i32_1 = arith.constant 0 : i32
    return %c0_i32, %c0_i32_0 : i32, i32
  }
  func.func @transform_5(%arg0: i32, %arg1: i32) -> (i32, i32) {
    %c0_i32 = arith.constant 0 : i32
    %c0_i32_0 = arith.constant 0 : i32
    %c0_i32_1 = arith.constant 0 : i32
    return %c0_i32, %c0_i32_0 : i32, i32
  }
  func.func @transform_6(%arg0: i32, %arg1: i32) -> (i32, i32) {
    %c0_i32 = arith.constant 0 : i32
    %c0_i32_0 = arith.constant 0 : i32
    %c0_i32_1 = arith.constant 0 : i32
    return %c0_i32, %c0_i32_0 : i32, i32
  }
  func.func @transform_7(%arg0: i32, %arg1: i32) -> (i32, i32) {
    %c0_i32 = arith.constant 0 : i32
    %c0_i32_0 = arith.constant 0 : i32
    %c0_i32_1 = arith.constant 0 : i32
    return %c0_i32, %c0_i32_0 : i32, i32
  }
  func.func @transform_8(%arg0: i32, %arg1: i32) -> (i32, i32) {
    %c0_i32 = arith.constant 0 : i32
    %c0_i32_0 = arith.constant 0 : i32
    %c0_i32_1 = arith.constant 0 : i32
    return %c0_i32, %c0_i32_0 : i32, i32
  }
  func.func @transform_9(%arg0: i32, %arg1: i32) -> (i32, i32) {
    %c0_i32 = arith.constant 0 : i32
    %c0_i32_0 = arith.constant 0 : i32
    %c0_i32_1 = arith.constant 0 : i32
    return %c0_i32, %c0_i32_0 : i32, i32
  }
  func.func @transform_10(%arg0: i32, %arg1: i32) -> (i32, i32) {
    %c1_i32 = arith.constant 1 : i32
    %0 = arith.muli %arg0, %c1_i32 : i32
    %1 = arith.addi %0, %arg1 : i32
    %c0_i32 = arith.constant 0 : i32
    %c0_i32_0 = arith.constant 0 : i32
    return %1, %c0_i32 : i32, i32
  }
}

module attributes {stable_mosaic.version = 11 : i64} {
  func.func @_mha_block_kernel(%arg0: i32, %arg1: i32, %arg2: memref<8x32xf32, #tpu.memory_space<vmem>>, %arg3: memref<8x32xf32, #tpu.memory_space<vmem>>, %arg4: memref<32x32xf32, #tpu.memory_space<vmem>>, %arg5: memref<1x32xf32, #tpu.memory_space<vmem>>, %arg6: memref<32x64xf32, #tpu.memory_space<vmem>>, %arg7: memref<1x64xf32, #tpu.memory_space<vmem>>, %arg8: memref<32x32xf32, #tpu.memory_space<vmem>>, %arg9: memref<1x32xf32, #tpu.memory_space<vmem>>, %arg10: memref<1x32xf32, #tpu.memory_space<vmem>>, %arg11: memref<1x32xf32, #tpu.memory_space<vmem>>, %arg12: memref<8x32xf32, #tpu.memory_space<vmem>>, %arg13: memref<8x32xf32, #tpu.memory_space<vmem>>) attributes {dimension_semantics = [#tpu.dimension_semantics<parallel>, #tpu.dimension_semantics<parallel>], iteration_bounds = array<i64: 2, 1>, scalar_prefetch = 0 : i64, scratch_operands = 1 : i64, tpu.core_type = #tpu.core_type<tc>, window_params = [{transform_indices = @transform_0, window_bounds = array<i64: 8, 32>}, {transform_indices = @transform_1, window_bounds = array<i64: 8, 32>}, {pipeline_mode = #tpu.pipeline_mode<synchronous>, transform_indices = @transform_2, window_bounds = array<i64: 32, 32>}, {pipeline_mode = #tpu.pipeline_mode<synchronous>, transform_indices = @transform_3, window_bounds = array<i64: 1, 32>}, {pipeline_mode = #tpu.pipeline_mode<synchronous>, transform_indices = @transform_4, window_bounds = array<i64: 32, 64>}, {pipeline_mode = #tpu.pipeline_mode<synchronous>, transform_indices = @transform_5, window_bounds = array<i64: 1, 64>}, {pipeline_mode = #tpu.pipeline_mode<synchronous>, transform_indices = @transform_6, window_bounds = array<i64: 32, 32>}, {pipeline_mode = #tpu.pipeline_mode<synchronous>, transform_indices = @transform_7, window_bounds = array<i64: 1, 32>}, {pipeline_mode = #tpu.pipeline_mode<synchronous>, transform_indices = @transform_8, window_bounds = array<i64: 1, 32>}, {pipeline_mode = #tpu.pipeline_mode<synchronous>, transform_indices = @transform_9, window_bounds = array<i64: 1, 32>}, {transform_indices = @transform_10, window_bounds = array<i64: 8, 32>}]} {
    %c0 = arith.constant 0 : index
    %c0_0 = arith.constant 0 : index
    %0 = vector.load %arg2[%c0, %c0_0] : memref<8x32xf32, #tpu.memory_space<vmem>>, vector<8x32xf32>
    %c0_1 = arith.constant 0 : index
    %c0_2 = arith.constant 0 : index
    %1 = vector.load %arg4[%c0_1, %c0_2] : memref<32x32xf32, #tpu.memory_space<vmem>>, vector<32x32xf32>
    %cst = arith.constant dense<0.000000e+00> : vector<8x32xf32>
    %2 = tpu.matmul %0, %1, %cst {dimension_numbers = #tpu.dot_dimension_numbers<[1], [0], [0], [1], [0, 0, 1, 1], [], []>} : vector<8x32xf32>, vector<32x32xf32>, vector<8x32xf32> -> vector<8x32xf32>
    %c0_3 = arith.constant 0 : index
    %c0_4 = arith.constant 0 : index
    %3 = vector.load %arg5[%c0_3, %c0_4] : memref<1x32xf32, #tpu.memory_space<vmem>>, vector<1x32xf32>
    %4 = vector.broadcast %3 : vector<1x32xf32> to vector<8x32xf32>
    %5 = arith.addf %2, %4 : vector<8x32xf32>
    %cst_5 = arith.constant 0.353553385 : f32
    %6 = vector.broadcast %cst_5 : f32 to vector<8x32xf32>
    %7 = arith.mulf %5, %6 : vector<8x32xf32>
    %c0_6 = arith.constant 0 : index
    %c0_7 = arith.constant 0 : index
    %8 = vector.load %arg3[%c0_6, %c0_7] : memref<8x32xf32, #tpu.memory_space<vmem>>, vector<8x32xf32>
    %c0_8 = arith.constant 0 : index
    %c0_9 = arith.constant 0 : index
    %9 = vector.load %arg6[%c0_8, %c0_9] : memref<32x64xf32, #tpu.memory_space<vmem>>, vector<32x64xf32>
    %cst_10 = arith.constant dense<0.000000e+00> : vector<8x64xf32>
    %10 = tpu.matmul %8, %9, %cst_10 {dimension_numbers = #tpu.dot_dimension_numbers<[1], [0], [0], [1], [0, 0, 1, 1], [], []>} : vector<8x32xf32>, vector<32x64xf32>, vector<8x64xf32> -> vector<8x64xf32>
    %c0_11 = arith.constant 0 : index
    %c0_12 = arith.constant 0 : index
    %11 = vector.load %arg7[%c0_11, %c0_12] : memref<1x64xf32, #tpu.memory_space<vmem>>, vector<1x64xf32>
    %12 = vector.broadcast %11 : vector<1x64xf32> to vector<8x64xf32>
    %13 = arith.addf %10, %12 : vector<8x64xf32>
    %14 = vector.extract_strided_slice %13 {offsets = [0, 0], sizes = [8, 32], strides = [1, 1]} : vector<8x64xf32> to vector<8x32xf32>
    %15 = vector.extract_strided_slice %13 {offsets = [0, 32], sizes = [8, 32], strides = [1, 1]} : vector<8x64xf32> to vector<8x32xf32>
    %c0_13 = arith.constant 0 : index
    %c0_14 = arith.constant 0 : index
    %16 = vector.load %arg8[%c0_13, %c0_14] : memref<32x32xf32, #tpu.memory_space<vmem>>, vector<32x32xf32>
    %c8_i32 = arith.constant 8 : i32
    %17 = arith.muli %arg1, %c8_i32 : i32
    %18 = tpu.iota {dimensions = array<i32: 0>} : vector<8x8xi32>
    %19 = vector.broadcast %17 : i32 to vector<8x8xi32>
    %20 = arith.addi %18, %19 : vector<8x8xi32>
    %21 = tpu.iota {dimensions = array<i32: 1>} : vector<8x8xi32>
    %22 = arith.cmpi sgt, %21, %20 : vector<8x8xi32>
    %cst_15 = arith.constant -1.000000e+30 : f32
    %cst_16 = arith.constant 0.000000e+00 : f32
    %23 = vector.broadcast %cst_15 : f32 to vector<8x8xf32>
    %24 = vector.broadcast %cst_16 : f32 to vector<8x8xf32>
    %25 = arith.select %22, %23, %24 : vector<8x8xi1>, vector<8x8xf32>
    %c0_17 = arith.constant 0 : index
    %c0_18 = arith.constant 0 : index
    %26 = vector.load %arg9[%c0_17, %c0_18] : memref<1x32xf32, #tpu.memory_space<vmem>>, vector<1x32xf32>
    %27 = vector.broadcast %26 : vector<1x32xf32> to vector<8x32xf32>
    %28 = arith.addf %0, %27 : vector<8x32xf32>
    %c0_19 = arith.constant 0 : index
    %c0_20 = arith.constant 0 : index
    %29 = vector.load %arg13[%c0_19, %c0_20] : memref<8x32xf32, #tpu.memory_space<vmem>>, vector<8x32xf32>
    tpu.vector_store %arg13[%c0_19, %c0_20], %28 {strides = array<i32>} : memref<8x32xf32, #tpu.memory_space<vmem>>, vector<8x32xf32>,
    %30 = vector.extract_strided_slice %7 {offsets = [0, 0], sizes = [8, 8], strides = [1, 1]} : vector<8x32xf32> to vector<8x8xf32>
    %31 = vector.extract_strided_slice %14 {offsets = [0, 0], sizes = [8, 8], strides = [1, 1]} : vector<8x32xf32> to vector<8x8xf32>
    %cst_21 = arith.constant dense<0.000000e+00> : vector<8x8xf32>
    %32 = tpu.matmul %30, %31, %cst_21 {dimension_numbers = #tpu.dot_dimension_numbers<[1], [1], [0], [0], [0, 0, 1, 0], [], []>} : vector<8x8xf32>, vector<8x8xf32>, vector<8x8xf32> -> vector<8x8xf32>
    %33 = arith.addf %32, %25 : vector<8x8xf32>
    %cst_22 = arith.constant dense<0xFF800000> : vector<8xf32>
    %34 = vector.multi_reduction <maximumf>, %33, %cst_22 [1] : vector<8x8xf32> to vector<8xf32>
    %35 = vector.shape_cast %34 : vector<8xf32> to vector<8x1xf32>
    %36 = vector.broadcast %35 : vector<8x1xf32> to vector<8x8xf32>
    %37 = arith.subf %33, %36 : vector<8x8xf32>
    %38 = math.exp %37 : vector<8x8xf32>
    %cst_23 = arith.constant dense<0.000000e+00> : vector<8xf32>
    %39 = vector.multi_reduction <add>, %38, %cst_23 [1] : vector<8x8xf32> to vector<8xf32>
    %40 = vector.shape_cast %39 : vector<8xf32> to vector<8x1xf32>
    %41 = tpu.reciprocal %40 {approx = true} : vector<8x1xf32> -> vector<8x1xf32>
    %42 = vector.extract_strided_slice %15 {offsets = [0, 0], sizes = [8, 8], strides = [1, 1]} : vector<8x32xf32> to vector<8x8xf32>
    %cst_24 = arith.constant dense<0.000000e+00> : vector<8x8xf32>
    %43 = tpu.matmul %38, %42, %cst_24 {dimension_numbers = #tpu.dot_dimension_numbers<[1], [0], [0], [1], [0, 0, 1, 1], [], []>} : vector<8x8xf32>, vector<8x8xf32>, vector<8x8xf32> -> vector<8x8xf32>
    %44 = vector.broadcast %41 : vector<8x1xf32> to vector<8x8xf32>
    %45 = arith.mulf %43, %44 : vector<8x8xf32>
    %c0_25 = arith.constant 0 : index
    %c0_26 = arith.constant 0 : index
    %46 = vector.load %arg13[%c0_25, %c0_26] : memref<8x32xf32, #tpu.memory_space<vmem>>, vector<8x32xf32>
    %47 = vector.extract_strided_slice %16 {offsets = [0, 0], sizes = [8, 32], strides = [1, 1]} : vector<32x32xf32> to vector<8x32xf32>
    %cst_27 = arith.constant dense<0.000000e+00> : vector<8x32xf32>
    %48 = tpu.matmul %45, %47, %cst_27 {dimension_numbers = #tpu.dot_dimension_numbers<[1], [0], [0], [1], [0, 0, 1, 1], [], []>} : vector<8x8xf32>, vector<8x32xf32>, vector<8x32xf32> -> vector<8x32xf32>
    %49 = arith.addf %46, %48 : vector<8x32xf32>
    %c0_28 = arith.constant 0 : index
    %c0_29 = arith.constant 0 : index
    %50 = vector.load %arg13[%c0_28, %c0_29] : memref<8x32xf32, #tpu.memory_space<vmem>>, vector<8x32xf32>
    tpu.vector_store %arg13[%c0_28, %c0_29], %49 {strides = array<i32>} : memref<8x32xf32, #tpu.memory_space<vmem>>, vector<8x32xf32>,
    %51 = vector.extract_strided_slice %7 {offsets = [0, 8], sizes = [8, 8], strides = [1, 1]} : vector<8x32xf32> to vector<8x8xf32>
    %52 = vector.extract_strided_slice %14 {offsets = [0, 8], sizes = [8, 8], strides = [1, 1]} : vector<8x32xf32> to vector<8x8xf32>
    %cst_30 = arith.constant dense<0.000000e+00> : vector<8x8xf32>
    %53 = tpu.matmul %51, %52, %cst_30 {dimension_numbers = #tpu.dot_dimension_numbers<[1], [1], [0], [0], [0, 0, 1, 0], [], []>} : vector<8x8xf32>, vector<8x8xf32>, vector<8x8xf32> -> vector<8x8xf32>
    %54 = arith.addf %53, %25 : vector<8x8xf32>
    %cst_31 = arith.constant dense<0xFF800000> : vector<8xf32>
    %55 = vector.multi_reduction <maximumf>, %54, %cst_31 [1] : vector<8x8xf32> to vector<8xf32>
    %56 = vector.shape_cast %55 : vector<8xf32> to vector<8x1xf32>
    %57 = vector.broadcast %56 : vector<8x1xf32> to vector<8x8xf32>
    %58 = arith.subf %54, %57 : vector<8x8xf32>
    %59 = math.exp %58 : vector<8x8xf32>
    %cst_32 = arith.constant dense<0.000000e+00> : vector<8xf32>
    %60 = vector.multi_reduction <add>, %59, %cst_32 [1] : vector<8x8xf32> to vector<8xf32>
    %61 = vector.shape_cast %60 : vector<8xf32> to vector<8x1xf32>
    %62 = tpu.reciprocal %61 {approx = true} : vector<8x1xf32> -> vector<8x1xf32>
    %63 = vector.extract_strided_slice %15 {offsets = [0, 8], sizes = [8, 8], strides = [1, 1]} : vector<8x32xf32> to vector<8x8xf32>
    %cst_33 = arith.constant dense<0.000000e+00> : vector<8x8xf32>
    %64 = tpu.matmul %59, %63, %cst_33 {dimension_numbers = #tpu.dot_dimension_numbers<[1], [0], [0], [1], [0, 0, 1, 1], [], []>} : vector<8x8xf32>, vector<8x8xf32>, vector<8x8xf32> -> vector<8x8xf32>
    %65 = vector.broadcast %62 : vector<8x1xf32> to vector<8x8xf32>
    %66 = arith.mulf %64, %65 : vector<8x8xf32>
    %c0_34 = arith.constant 0 : index
    %c0_35 = arith.constant 0 : index
    %67 = vector.load %arg13[%c0_34, %c0_35] : memref<8x32xf32, #tpu.memory_space<vmem>>, vector<8x32xf32>
    %68 = vector.extract_strided_slice %16 {offsets = [8, 0], sizes = [8, 32], strides = [1, 1]} : vector<32x32xf32> to vector<8x32xf32>
    %cst_36 = arith.constant dense<0.000000e+00> : vector<8x32xf32>
    %69 = tpu.matmul %66, %68, %cst_36 {dimension_numbers = #tpu.dot_dimension_numbers<[1], [0], [0], [1], [0, 0, 1, 1], [], []>} : vector<8x8xf32>, vector<8x32xf32>, vector<8x32xf32> -> vector<8x32xf32>
    %70 = arith.addf %67, %69 : vector<8x32xf32>
    %c0_37 = arith.constant 0 : index
    %c0_38 = arith.constant 0 : index
    %71 = vector.load %arg13[%c0_37, %c0_38] : memref<8x32xf32, #tpu.memory_space<vmem>>, vector<8x32xf32>
    tpu.vector_store %arg13[%c0_37, %c0_38], %70 {strides = array<i32>} : memref<8x32xf32, #tpu.memory_space<vmem>>, vector<8x32xf32>,
    %72 = vector.extract_strided_slice %7 {offsets = [0, 16], sizes = [8, 8], strides = [1, 1]} : vector<8x32xf32> to vector<8x8xf32>
    %73 = vector.extract_strided_slice %14 {offsets = [0, 16], sizes = [8, 8], strides = [1, 1]} : vector<8x32xf32> to vector<8x8xf32>
    %cst_39 = arith.constant dense<0.000000e+00> : vector<8x8xf32>
    %74 = tpu.matmul %72, %73, %cst_39 {dimension_numbers = #tpu.dot_dimension_numbers<[1], [1], [0], [0], [0, 0, 1, 0], [], []>} : vector<8x8xf32>, vector<8x8xf32>, vector<8x8xf32> -> vector<8x8xf32>
    %75 = arith.addf %74, %25 : vector<8x8xf32>
    %cst_40 = arith.constant dense<0xFF800000> : vector<8xf32>
    %76 = vector.multi_reduction <maximumf>, %75, %cst_40 [1] : vector<8x8xf32> to vector<8xf32>
    %77 = vector.shape_cast %76 : vector<8xf32> to vector<8x1xf32>
    %78 = vector.broadcast %77 : vector<8x1xf32> to vector<8x8xf32>
    %79 = arith.subf %75, %78 : vector<8x8xf32>
    %80 = math.exp %79 : vector<8x8xf32>
    %cst_41 = arith.constant dense<0.000000e+00> : vector<8xf32>
    %81 = vector.multi_reduction <add>, %80, %cst_41 [1] : vector<8x8xf32> to vector<8xf32>
    %82 = vector.shape_cast %81 : vector<8xf32> to vector<8x1xf32>
    %83 = tpu.reciprocal %82 {approx = true} : vector<8x1xf32> -> vector<8x1xf32>
    %84 = vector.extract_strided_slice %15 {offsets = [0, 16], sizes = [8, 8], strides = [1, 1]} : vector<8x32xf32> to vector<8x8xf32>
    %cst_42 = arith.constant dense<0.000000e+00> : vector<8x8xf32>
    %85 = tpu.matmul %80, %84, %cst_42 {dimension_numbers = #tpu.dot_dimension_numbers<[1], [0], [0], [1], [0, 0, 1, 1], [], []>} : vector<8x8xf32>, vector<8x8xf32>, vector<8x8xf32> -> vector<8x8xf32>
    %86 = vector.broadcast %83 : vector<8x1xf32> to vector<8x8xf32>
    %87 = arith.mulf %85, %86 : vector<8x8xf32>
    %c0_43 = arith.constant 0 : index
    %c0_44 = arith.constant 0 : index
    %88 = vector.load %arg13[%c0_43, %c0_44] : memref<8x32xf32, #tpu.memory_space<vmem>>, vector<8x32xf32>
    %89 = vector.extract_strided_slice %16 {offsets = [16, 0], sizes = [8, 32], strides = [1, 1]} : vector<32x32xf32> to vector<8x32xf32>
    %cst_45 = arith.constant dense<0.000000e+00> : vector<8x32xf32>
    %90 = tpu.matmul %87, %89, %cst_45 {dimension_numbers = #tpu.dot_dimension_numbers<[1], [0], [0], [1], [0, 0, 1, 1], [], []>} : vector<8x8xf32>, vector<8x32xf32>, vector<8x32xf32> -> vector<8x32xf32>
    %91 = arith.addf %88, %90 : vector<8x32xf32>
    %c0_46 = arith.constant 0 : index
    %c0_47 = arith.constant 0 : index
    %92 = vector.load %arg13[%c0_46, %c0_47] : memref<8x32xf32, #tpu.memory_space<vmem>>, vector<8x32xf32>
    tpu.vector_store %arg13[%c0_46, %c0_47], %91 {strides = array<i32>} : memref<8x32xf32, #tpu.memory_space<vmem>>, vector<8x32xf32>,
    %93 = vector.extract_strided_slice %7 {offsets = [0, 24], sizes = [8, 8], strides = [1, 1]} : vector<8x32xf32> to vector<8x8xf32>
    %94 = vector.extract_strided_slice %14 {offsets = [0, 24], sizes = [8, 8], strides = [1, 1]} : vector<8x32xf32> to vector<8x8xf32>
    %cst_48 = arith.constant dense<0.000000e+00> : vector<8x8xf32>
    %95 = tpu.matmul %93, %94, %cst_48 {dimension_numbers = #tpu.dot_dimension_numbers<[1], [1], [0], [0], [0, 0, 1, 0], [], []>} : vector<8x8xf32>, vector<8x8xf32>, vector<8x8xf32> -> vector<8x8xf32>
    %96 = arith.addf %95, %25 : vector<8x8xf32>
    %cst_49 = arith.constant dense<0xFF800000> : vector<8xf32>
    %97 = vector.multi_reduction <maximumf>, %96, %cst_49 [1] : vector<8x8xf32> to vector<8xf32>
    %98 = vector.shape_cast %97 : vector<8xf32> to vector<8x1xf32>
    %99 = vector.broadcast %98 : vector<8x1xf32> to vector<8x8xf32>
    %100 = arith.subf %96, %99 : vector<8x8xf32>
    %101 = math.exp %100 : vector<8x8xf32>
    %cst_50 = arith.constant dense<0.000000e+00> : vector<8xf32>
    %102 = vector.multi_reduction <add>, %101, %cst_50 [1] : vector<8x8xf32> to vector<8xf32>
    %103 = vector.shape_cast %102 : vector<8xf32> to vector<8x1xf32>
    %104 = tpu.reciprocal %103 {approx = true} : vector<8x1xf32> -> vector<8x1xf32>
    %105 = vector.extract_strided_slice %15 {offsets = [0, 24], sizes = [8, 8], strides = [1, 1]} : vector<8x32xf32> to vector<8x8xf32>
    %cst_51 = arith.constant dense<0.000000e+00> : vector<8x8xf32>
    %106 = tpu.matmul %101, %105, %cst_51 {dimension_numbers = #tpu.dot_dimension_numbers<[1], [0], [0], [1], [0, 0, 1, 1], [], []>} : vector<8x8xf32>, vector<8x8xf32>, vector<8x8xf32> -> vector<8x8xf32>
    %107 = vector.broadcast %104 : vector<8x1xf32> to vector<8x8xf32>
    %108 = arith.mulf %106, %107 : vector<8x8xf32>
    %c0_52 = arith.constant 0 : index
    %c0_53 = arith.constant 0 : index
    %109 = vector.load %arg13[%c0_52, %c0_53] : memref<8x32xf32, #tpu.memory_space<vmem>>, vector<8x32xf32>
    %110 = vector.extract_strided_slice %16 {offsets = [24, 0], sizes = [8, 32], strides = [1, 1]} : vector<32x32xf32> to vector<8x32xf32>
    %cst_54 = arith.constant dense<0.000000e+00> : vector<8x32xf32>
    %111 = tpu.matmul %108, %110, %cst_54 {dimension_numbers = #tpu.dot_dimension_numbers<[1], [0], [0], [1], [0, 0, 1, 1], [], []>} : vector<8x8xf32>, vector<8x32xf32>, vector<8x32xf32> -> vector<8x32xf32>
    %112 = arith.addf %109, %111 : vector<8x32xf32>
    %c0_55 = arith.constant 0 : index
    %c0_56 = arith.constant 0 : index
    %113 = vector.load %arg13[%c0_55, %c0_56] : memref<8x32xf32, #tpu.memory_space<vmem>>, vector<8x32xf32>
    tpu.vector_store %arg13[%c0_55, %c0_56], %112 {strides = array<i32>} : memref<8x32xf32, #tpu.memory_space<vmem>>, vector<8x32xf32>,
    %c0_57 = arith.constant 0 : index
    %c0_58 = arith.constant 0 : index
    %114 = vector.load %arg13[%c0_57, %c0_58] : memref<8x32xf32, #tpu.memory_space<vmem>>, vector<8x32xf32>
    %cst_59 = arith.constant dense<0.000000e+00> : vector<8xf32>
    %115 = vector.multi_reduction <add>, %114, %cst_59 [1] : vector<8x32xf32> to vector<8xf32>
    %116 = vector.shape_cast %115 : vector<8xf32> to vector<8x1xf32>
    %cst_60 = arith.constant 3.200000e+01 : f32
    %117 = vector.broadcast %cst_60 : f32 to vector<8x1xf32>
    %118 = arith.divf %116, %117 : vector<8x1xf32>
    %119 = vector.broadcast %118 : vector<8x1xf32> to vector<8x32xf32>
    %120 = arith.subf %114, %119 : vector<8x32xf32>
    %121 = arith.mulf %120, %120 : vector<8x32xf32>
    %cst_61 = arith.constant dense<0.000000e+00> : vector<8xf32>
    %122 = vector.multi_reduction <add>, %121, %cst_61 [1] : vector<8x32xf32> to vector<8xf32>
    %123 = vector.shape_cast %122 : vector<8xf32> to vector<8x1xf32>
    %cst_62 = arith.constant 3.200000e+01 : f32
    %124 = vector.broadcast %cst_62 : f32 to vector<8x1xf32>
    %125 = arith.divf %123, %124 : vector<8x1xf32>
    %cst_63 = arith.constant 9.99999974E-6 : f32
    %126 = vector.broadcast %cst_63 : f32 to vector<8x1xf32>
    %127 = arith.addf %125, %126 : vector<8x1xf32>
    %128 = math.rsqrt %127 : vector<8x1xf32>
    %129 = vector.broadcast %128 : vector<8x1xf32> to vector<8x32xf32>
    %130 = arith.mulf %120, %129 : vector<8x32xf32>
    %c0_64 = arith.constant 0 : index
    %c0_65 = arith.constant 0 : index
    %131 = vector.load %arg10[%c0_64, %c0_65] : memref<1x32xf32, #tpu.memory_space<vmem>>, vector<1x32xf32>
    %132 = vector.broadcast %131 : vector<1x32xf32> to vector<8x32xf32>
    %133 = arith.mulf %130, %132 : vector<8x32xf32>
    %c0_66 = arith.constant 0 : index
    %c0_67 = arith.constant 0 : index
    %134 = vector.load %arg11[%c0_66, %c0_67] : memref<1x32xf32, #tpu.memory_space<vmem>>, vector<1x32xf32>
    %135 = vector.broadcast %134 : vector<1x32xf32> to vector<8x32xf32>
    %136 = arith.addf %133, %135 : vector<8x32xf32>
    %c0_68 = arith.constant 0 : index
    %c0_69 = arith.constant 0 : index
    %137 = vector.load %arg12[%c0_68, %c0_69] : memref<8x32xf32, #tpu.memory_space<vmem>>, vector<8x32xf32>
    tpu.vector_store %arg12[%c0_68, %c0_69], %136 {strides = array<i32>} : memref<8x32xf32, #tpu.memory_space<vmem>>, vector<8x32xf32>,
    return
  }
  func.func @transform_0(%arg0: i32, %arg1: i32) -> (i32, i32) {
    %c1_i32 = arith.constant 1 : i32
    %0 = arith.muli %arg0, %c1_i32 : i32
    %1 = arith.addi %0, %arg1 : i32
    %c0_i32 = arith.constant 0 : i32
    %c0_i32_0 = arith.constant 0 : i32
    return %1, %c0_i32 : i32, i32
  }
  func.func @transform_1(%arg0: i32, %arg1: i32) -> (i32, i32) {
    %c0_i32 = arith.constant 0 : i32
    %c0_i32_0 = arith.constant 0 : i32
    return %arg0, %c0_i32 : i32, i32
  }
  func.func @transform_2(%arg0: i32, %arg1: i32) -> (i32, i32) {
    %c0_i32 = arith.constant 0 : i32
    %c0_i32_0 = arith.constant 0 : i32
    %c0_i32_1 = arith.constant 0 : i32
    return %c0_i32, %c0_i32_0 : i32, i32
  }
  func.func @transform_3(%arg0: i32, %arg1: i32) -> (i32, i32) {
    %c0_i32 = arith.constant 0 : i32
    %c0_i32_0 = arith.constant 0 : i32
    %c0_i32_1 = arith.constant 0 : i32
    return %c0_i32, %c0_i32_0 : i32, i32
  }
  func.func @transform_4(%arg0: i32, %arg1: i32) -> (i32, i32) {
    %c0_i32 = arith.constant 0 : i32
    %c0_i32_0 = arith.constant 0 : i32
    %c0_i32_1 = arith.constant 0 : i32
    return %c0_i32, %c0_i32_0 : i32, i32
  }
  func.func @transform_5(%arg0: i32, %arg1: i32) -> (i32, i32) {
    %c0_i32 = arith.constant 0 : i32
    %c0_i32_0 = arith.constant 0 : i32
    %c0_i32_1 = arith.constant 0 : i32
    return %c0_i32, %c0_i32_0 : i32, i32
  }
  func.func @transform_6(%arg0: i32, %arg1: i32) -> (i32, i32) {
    %c0_i32 = arith.constant 0 : i32
    %c0_i32_0 = arith.constant 0 : i32
    %c0_i32_1 = arith.constant 0 : i32
    return %c0_i32, %c0_i32_0 : i32, i32
  }
  func.func @transform_7(%arg0: i32, %arg1: i32) -> (i32, i32) {
    %c0_i32 = arith.constant 0 : i32
    %c0_i32_0 = arith.constant 0 : i32
    %c0_i32_1 = arith.constant 0 : i32
    return %c0_i32, %c0_i32_0 : i32, i32
  }
  func.func @transform_8(%arg0: i32, %arg1: i32) -> (i32, i32) {
    %c0_i32 = arith.constant 0 : i32
    %c0_i32_0 = arith.constant 0 : i32
    %c0_i32_1 = arith.constant 0 : i32
    return %c0_i32, %c0_i32_0 : i32, i32
  }
  func.func @transform_9(%arg0: i32, %arg1: i32) -> (i32, i32) {
    %c0_i32 = arith.constant 0 : i32
    %c0_i32_0 = arith.constant 0 : i32
    %c0_i32_1 = arith.constant 0 : i32
    return %c0_i32, %c0_i32_0 : i32, i32
  }
  func.func @transform_10(%arg0: i32, %arg1: i32) -> (i32, i32) {
    %c1_i32 = arith.constant 1 : i32
    %0 = arith.muli %arg0, %c1_i32 : i32
    %1 = arith.addi %0, %arg1 : i32
    %c0_i32 = arith.constant 0 : i32
    %c0_i32_0 = arith.constant 0 : i32
    return %1, %c0_i32 : i32, i32
  }
}

module attributes {stable_mosaic.version = 11 : i64} {
  func.func @_layernorm_kernel(%arg0: i32, %arg1: memref<16x32xf32, #tpu.memory_space<vmem>>, %arg2: memref<1x32xf32, #tpu.memory_space<vmem>>, %arg3: memref<1x32xf32, #tpu.memory_space<vmem>>, %arg4: memref<16x32xf32, #tpu.memory_space<vmem>>) attributes {dimension_semantics = [#tpu.dimension_semantics<parallel>], iteration_bounds = array<i64: 1>, scalar_prefetch = 0 : i64, scratch_operands = 0 : i64, tpu.core_type = #tpu.core_type<tc>, window_params = [{transform_indices = @transform_0, window_bounds = array<i64: 16, 32>}, {pipeline_mode = #tpu.pipeline_mode<synchronous>, transform_indices = @transform_1, window_bounds = array<i64: 1, 32>}, {pipeline_mode = #tpu.pipeline_mode<synchronous>, transform_indices = @transform_2, window_bounds = array<i64: 1, 32>}, {transform_indices = @transform_3, window_bounds = array<i64: 16, 32>}]} {
    %c0 = arith.constant 0 : index
    %c0_0 = arith.constant 0 : index
    %0 = vector.load %arg1[%c0, %c0_0] : memref<16x32xf32, #tpu.memory_space<vmem>>, vector<16x32xf32>
    %cst = arith.constant dense<0.000000e+00> : vector<16xf32>
    %1 = vector.multi_reduction <add>, %0, %cst [1] : vector<16x32xf32> to vector<16xf32>
    %2 = vector.shape_cast %1 : vector<16xf32> to vector<16x1xf32>
    %cst_1 = arith.constant 3.200000e+01 : f32
    %3 = vector.broadcast %cst_1 : f32 to vector<16x1xf32>
    %4 = arith.divf %2, %3 : vector<16x1xf32>
    %5 = vector.broadcast %4 : vector<16x1xf32> to vector<16x32xf32>
    %6 = arith.subf %0, %5 : vector<16x32xf32>
    %7 = arith.mulf %6, %6 : vector<16x32xf32>
    %cst_2 = arith.constant dense<0.000000e+00> : vector<16xf32>
    %8 = vector.multi_reduction <add>, %7, %cst_2 [1] : vector<16x32xf32> to vector<16xf32>
    %9 = vector.shape_cast %8 : vector<16xf32> to vector<16x1xf32>
    %cst_3 = arith.constant 3.200000e+01 : f32
    %10 = vector.broadcast %cst_3 : f32 to vector<16x1xf32>
    %11 = arith.divf %9, %10 : vector<16x1xf32>
    %cst_4 = arith.constant 9.99999974E-6 : f32
    %12 = vector.broadcast %cst_4 : f32 to vector<16x1xf32>
    %13 = arith.addf %11, %12 : vector<16x1xf32>
    %14 = math.rsqrt %13 : vector<16x1xf32>
    %15 = vector.broadcast %14 : vector<16x1xf32> to vector<16x32xf32>
    %16 = arith.mulf %6, %15 : vector<16x32xf32>
    %c0_5 = arith.constant 0 : index
    %c0_6 = arith.constant 0 : index
    %17 = vector.load %arg2[%c0_5, %c0_6] : memref<1x32xf32, #tpu.memory_space<vmem>>, vector<1x32xf32>
    %18 = vector.broadcast %17 : vector<1x32xf32> to vector<16x32xf32>
    %19 = arith.mulf %16, %18 : vector<16x32xf32>
    %c0_7 = arith.constant 0 : index
    %c0_8 = arith.constant 0 : index
    %20 = vector.load %arg3[%c0_7, %c0_8] : memref<1x32xf32, #tpu.memory_space<vmem>>, vector<1x32xf32>
    %21 = vector.broadcast %20 : vector<1x32xf32> to vector<16x32xf32>
    %22 = arith.addf %19, %21 : vector<16x32xf32>
    %c0_9 = arith.constant 0 : index
    %c0_10 = arith.constant 0 : index
    %23 = vector.load %arg4[%c0_9, %c0_10] : memref<16x32xf32, #tpu.memory_space<vmem>>, vector<16x32xf32>
    tpu.vector_store %arg4[%c0_9, %c0_10], %22 {strides = array<i32>} : memref<16x32xf32, #tpu.memory_space<vmem>>, vector<16x32xf32>,
    return
  }
  func.func @transform_0(%arg0: i32) -> (i32, i32) {
    %c0_i32 = arith.constant 0 : i32
    %c0_i32_0 = arith.constant 0 : i32
    return %arg0, %c0_i32 : i32, i32
  }
  func.func @transform_1(%arg0: i32) -> (i32, i32) {
    %c0_i32 = arith.constant 0 : i32
    %c0_i32_0 = arith.constant 0 : i32
    %c0_i32_1 = arith.constant 0 : i32
    return %c0_i32, %c0_i32_0 : i32, i32
  }
  func.func @transform_2(%arg0: i32) -> (i32, i32) {
    %c0_i32 = arith.constant 0 : i32
    %c0_i32_0 = arith.constant 0 : i32
    %c0_i32_1 = arith.constant 0 : i32
    return %c0_i32, %c0_i32_0 : i32, i32
  }
  func.func @transform_3(%arg0: i32) -> (i32, i32) {
    %c0_i32 = arith.constant 0 : i32
    %c0_i32_0 = arith.constant 0 : i32
    return %arg0, %c0_i32 : i32, i32
  }
}

</mosaic_0001>

<bundles_post_ra>
// kernel: encoder_decoder_forward.13
= control target key start
LH: loop header
LB: loop body
LE: loop exit
PB: predicated region body
PF: predicated region fallthrough
CT: control target
= control target key end

     0   :  { %vm39_vm0 = vcmask 261120   ;;  %vm138_vm1 = vcmask 523264   ;;  %s463_s1 = inlined_call_operand.vmem [shape: f32[32,64], index: 1, kind: input, shape index: {}]   ;;  %s464_s0 = inlined_call_operand.vmem [shape: f32[16,32], index: 0, kind: input, shape index: {}]   ;;  %s465_s3 = inlined_call_operand.vmem [shape: f32[64,32], index: 3, kind: input, shape index: {}]   ;;  %s466_s2 = inlined_call_operand.vmem [shape: f32[1,64], index: 2, kind: input, shape index: {}]   ;;  %s467_s4 = inlined_call_operand.vmem [shape: f32[1,32], index: 4, kind: input, shape index: {}]   ;;  %s468_s5 = inlined_call_operand.vmem [shape: f32[1,32], index: 5, kind: input, shape index: {}]   ;;  %s469_s6 = inlined_call_operand.vmem [shape: f32[1,32], index: 6, kind: input, shape index: {}]   ;;  %s470_s7 = inlined_call_operand.vmem [shape: f32[16,32], index: 7, kind: output, shape index: {}]  }
   0x1   :  { %v28_v0 = vld [vmem:[%s463_s1] sm:$0xff]  ;;  %v29_v1 = vld [vmem:[%s463_s1 + $0x8] sm:$0xff]  ;;  %v30_v2 = vld [vmem:[%s463_s1 + $0x10] sm:$0xff] }
   0x2   :  { %v327_v3 = vpack.c.bf16 %v29_v1, %v28_v0  ;;  %v31_v4 = vld [vmem:[%s463_s1 + $0x18] sm:$0xff]  ;;  %v26_v5 = vld [vmem:[%s464_s0] sm:$0xff]  ;;  %v124_v8 = vld [vmem:[%s465_s3 + $0x8] sm:$0xff] }
   0x3   :  { %v331_v6 = vpack.c.bf16 %v31_v4, %v30_v2  ;;  %305 = vmatprep.mubr.msk.f32.mxu0 %vm39_vm0, %v26_v5  ;;  %v123_v7 = vld [vmem:[%s465_s3] sm:$0xff]  ;;  %v125_v9 = vld [vmem:[%s465_s3 + $0x10] sm:$0xff]  ;;  %v126_v11 = vld [vmem:[%s465_s3 + $0x18] sm:$0xff] }
   0x4   :  { %328 = vmatprep.subr.bf16.mxu0 %v327_v3  ;;  %v335_v10 = vpack.c.bf16 %v124_v8, %v123_v7  ;;  %v339_v12 = vpack.c.bf16 %v126_v11, %v125_v9  ;;  %v127_v13 = vld [vmem:[%s465_s3 + $0x20] sm:$0xff]  ;;  %v128_v14 = vld [vmem:[%s465_s3 + $0x28] sm:$0xff]  ;;  %v129_v17 = vld [vmem:[%s465_s3 + $0x30] sm:$0xff] }
   0x5   :  { %330 = vmatpush3.bf16.msra.mxu0 %v327_v3  ;;  %v343_v15 = vpack.c.bf16 %v128_v14, %v127_v13  ;;  %v27_v16 = vld [vmem:[%s464_s0 + $0x8] sm:$0xff]  ;;  %v130_v18 = vld [vmem:[%s465_s3 + $0x38] sm:$0xff]  ;;  %v273_v20 = vld [vmem:[%s466_s2] ss:$0 sm:$0xff] }
   0x6   :  { %332 = vmatprep.subr.bf16.mxu0 %v331_v6  ;;  %336 = vmatprep.subr.bf16.mxu1 %v335_v10  ;;  %v347_v19 = vpack.c.bf16 %v130_v18, %v129_v17  ;;  %v276_v27 = vld [vmem:[%s467_s4] ss:$0 sm:$0xff] }
   0x7   :  { %338 = vmatpush3.bf16.msra.mxu1 %v335_v10  ;;  %v279_v53 = vld [vmem:[%s468_s5] ss:$0 sm:$0xff] }
   0x8   :  { %340 = vmatprep.subr.bf16.mxu1 %v339_v12  ;;  %v280_v55 = vld [vmem:[%s469_s6] ss:$0 sm:$0xff] }
   0x9   :  { %334 = vmatpush3.bf16.msra.mxu0 %v331_v6 }
   0xb   :  { %342 = vmatpush3.bf16.msra.mxu1 %v339_v12 }
   0xc   :  { %306 = vmatmul.mubr.msk.f32.vlgmr.msra.gmra.mrb[0].mxu0 %vm39_vm0, %v27_v16  ;;  %344 = vmatprep.subr.bf16.mxu1 %v343_v15 }
   0xf   :  { %346 = vmatpush3.bf16.msra.mxu1 %v343_v15 }
  0x10   :  { %348 = vmatprep.subr.bf16.mxu1 %v347_v19 }
  0x13   :  { %350 = vmatpush3.bf16.msra.mxu1 %v347_v19 }
  0xdf   :  { %v307_v21 = vpop.f32.mrb[0].mxu0 }
  0xe0   :  { %v118_v22 = vadd.f32 %v307_v21, %v273_v20  ;;  %v112_v23 = vpop.f32.mrb[1].mxu0 }
  0xe1   :  { %v113_v24 = vadd.f32 %v273_v20, %v112_v23 }
  0xe2   :  { %v122_v26 = vmax.f32 %v118_v22, 0.0 }
  0xe3   :  { %v121_v25 = vmax.f32 %v113_v24, 0.0 }
  0xe5   :  { %324 = vmatprep.mubr.msk.f32.mxu1 %vm138_vm1, %v121_v25 }
  0xe6   :  { %325 = vmatmul.mubr.msk.f32.vlgmr.msra.gmra.mrb[0].mxu1 %vm138_vm1, %v122_v26 }
 0x1b9   :  { %v326_v28 = vpop.f32.mrb[0].mxu1 }
 0x1ba   :  { %v211_v29 = vpop.f32.mrb[1].mxu1  ;;  %v217_v30 = vadd.f32 %v326_v28, %v276_v27 }
 0x1bb   :  { %v212_v31 = vadd.f32 %v276_v27, %v211_v29 }
 0x1bc   :  { %v221_v34 = vadd.f32 %v217_v30, %v27_v16 }
 0x1bd   :  { %v220_v32 = vadd.f32 %v212_v31, %v26_v5 }
 0x1be   :  { %v225_v35 = vsel %vm39_vm0, %v221_v34, 0.0 }
 0x1bf   :  { %v222_v33 = vsel %vm39_vm0, %v220_v32, 0.0 }
 0x1c0   :  { %223 = vadd.xlane.f32.xlu0 %v222_v33 }
 0x1c4   :  { %226 = vadd.xlane.f32.xlu0 %v225_v35 }
 0x24d   :  { %v224_v36 = vpop.xlane.xlu0 %223 }
 0x24e   :  { %v229_v37 = vmul.f32 0.03125, %v224_v36 }
 0x250   :  { %v231_v38 = vsub.f32 %v220_v32, %v229_v37 }
 0x251   :  { %v227_v39 = vpop.xlane.xlu0 %226 }
 0x252   :  { %v230_v40 = vmul.f32 0.03125, %v227_v39  ;;  %v233_v41 = vmul.f32 %v231_v38, %v231_v38 }
 0x254   :  { %v232_v42 = vsub.f32 %v221_v34, %v230_v40  ;;  %v235_v43 = vsel %vm39_vm0, %v233_v41, 0.0 }
 0x255   :  { %236 = vadd.xlane.f32.xlu1 %v235_v43 }
 0x256   :  { %v234_v44 = vmul.f32 %v232_v42, %v232_v42 }
 0x258   :  { %v238_v45 = vsel %vm39_vm0, %v234_v44, 0.0 }
 0x259   :  { %239 = vadd.xlane.f32.xlu1 %v238_v45 }
 0x2e2   :  { %v237_v46 = vpop.xlane.xlu1 %236 }
 0x2e3   :  { %v241_v47 = vmul.f32 0.03125, %v237_v46 }
 0x2e5   :  { %v243_v48 = vadd.f32 1e-05, %v241_v47 }
 0x2e6   :  { %v240_v49 = vpop.xlane.xlu1 %239 }
 0x2e7   :  { %351 = vrsqrt.f32 %v243_v48  ;;  %v242_v50 = vmul.f32 0.03125, %v240_v49 }
 0x2e9   :  { %v244_v51 = vadd.f32 1e-05, %v242_v50 }
 0x2eb   :  { %353 = vrsqrt.f32 %v244_v51 }
 0x2f1   :  { %v352_v52 = vpop.eup %351 }
 0x2f2   :  { %v247_v54 = vmul.f32 %v352_v52, %v231_v38 }
 0x2f4   :  { %v256_v56 = vmul.f32 %v279_v53, %v247_v54 }
 0x2f5   :  { %v354_v57 = vpop.eup %353 }
 0x2f6   :  { %v265_v58 = vadd.f32 %v280_v55, %v256_v56  ;;  %v248_v59 = vmul.f32 %v354_v57, %v232_v42 }
 0x2f8   :  { %267 = vst.msk [vmem:[%s470_s7] sm:$0xff] %vm39_vm0, %v265_v58  ;;  %v257_v60 = vmul.f32 %v279_v53, %v248_v59 }
 0x2fa   :  { %v266_v61 = vadd.f32 %v280_v55, %v257_v60 }
 0x2fc   :  { %268 = vst.msk [vmem:[%s470_s7 + $0x8] sm:$0xff] %vm39_vm0, %v266_v61 }

// kernel: encoder_decoder_forward.16
= control target key start
LH: loop header
LB: loop body
LE: loop exit
PB: predicated region body
PF: predicated region fallthrough
CT: control target
= control target key end

     0   :  { %vm16_vm0 = vcmask 261120   ;;  %s118_s0 = inlined_call_operand.vmem [shape: f32[16,32], index: 0, kind: input, shape index: {}]   ;;  %s119_s1 = inlined_call_operand.vmem [shape: f32[1,32], index: 1, kind: input, shape index: {}]   ;;  %s120_s2 = inlined_call_operand.vmem [shape: f32[1,32], index: 2, kind: input, shape index: {}]   ;;  %s121_s3 = inlined_call_operand.vmem [shape: f32[16,32], index: 3, kind: output, shape index: {}]  }
   0x1   :  { %v14_v0 = vld [vmem:[%s118_s0] sm:$0xff]  ;;  %v15_v1 = vld [vmem:[%s118_s0 + $0x8] sm:$0xff] }
   0x2   :  { %v17_v2 = vsel %vm16_vm0, %v14_v0, 0.0  ;;  %v20_v3 = vsel %vm16_vm0, %v15_v1, 0.0  ;;  %v68_v21 = vld [vmem:[%s119_s1] ss:$0 sm:$0xff] }
   0x3   :  { %18 = vadd.xlane.f32.xlu0 %v17_v2  ;;  %v69_v23 = vld [vmem:[%s120_s2] ss:$0 sm:$0xff] }
   0x7   :  { %21 = vadd.xlane.f32.xlu0 %v20_v3 }
  0x90   :  { %v19_v4 = vpop.xlane.xlu0 %18 }
  0x91   :  { %v24_v5 = vmul.f32 0.03125, %v19_v4 }
  0x93   :  { %v26_v6 = vsub.f32 %v14_v0, %v24_v5 }
  0x94   :  { %v22_v7 = vpop.xlane.xlu0 %21 }
  0x95   :  { %v25_v8 = vmul.f32 0.03125, %v22_v7  ;;  %v28_v9 = vmul.f32 %v26_v6, %v26_v6 }
  0x97   :  { %v27_v10 = vsub.f32 %v15_v1, %v25_v8  ;;  %v30_v11 = vsel %vm16_vm0, %v28_v9, 0.0 }
  0x98   :  { %31 = vadd.xlane.f32.xlu1 %v30_v11 }
  0x99   :  { %v29_v12 = vmul.f32 %v27_v10, %v27_v10 }
  0x9b   :  { %v33_v13 = vsel %vm16_vm0, %v29_v12, 0.0 }
  0x9c   :  { %34 = vadd.xlane.f32.xlu1 %v33_v13 }
 0x125   :  { %v32_v14 = vpop.xlane.xlu1 %31 }
 0x126   :  { %v36_v15 = vmul.f32 0.03125, %v32_v14 }
 0x128   :  { %v38_v16 = vadd.f32 1e-05, %v36_v15 }
 0x129   :  { %v35_v17 = vpop.xlane.xlu1 %34 }
 0x12a   :  { %70 = vrsqrt.f32 %v38_v16  ;;  %v37_v18 = vmul.f32 0.03125, %v35_v17 }
 0x12c   :  { %v39_v19 = vadd.f32 1e-05, %v37_v18 }
 0x12e   :  { %72 = vrsqrt.f32 %v39_v19 }
 0x134   :  { %v71_v20 = vpop.eup %70 }
 0x135   :  { %v42_v22 = vmul.f32 %v71_v20, %v26_v6 }
 0x137   :  { %v51_v24 = vmul.f32 %v68_v21, %v42_v22 }
 0x138   :  { %v73_v25 = vpop.eup %72 }
 0x139   :  { %v60_v26 = vadd.f32 %v69_v23, %v51_v24  ;;  %v43_v27 = vmul.f32 %v73_v25, %v27_v10 }
 0x13b   :  { %62 = vst.msk [vmem:[%s121_s3] sm:$0xff] %vm16_vm0, %v60_v26  ;;  %v52_v28 = vmul.f32 %v68_v21, %v43_v27 }
 0x13d   :  { %v61_v29 = vadd.f32 %v69_v23, %v52_v28 }
 0x13f   :  { %63 = vst.msk [vmem:[%s121_s3 + $0x8] sm:$0xff] %vm16_vm0, %v61_v29 }

// kernel: encoder_decoder_forward.12
= control target key start
LH: loop header
LB: loop body
LE: loop exit
PB: predicated region body
PF: predicated region fallthrough
CT: control target
= control target key end

     0   :  { %s1955_s13 = smov 0   ;;  %s1957_s14 = smov 0   ;;  %s2141_s0 = inlined_call_operand.vmem [shape: f32[16,32], index: 0, kind: input, shape index: {}, may-alias: {0,1}]   ;;  %s2142_s1 = inlined_call_operand.vmem [shape: f32[16,32], index: 1, kind: input, shape index: {}, may-alias: {0,1}]   ;;  %s2143_s2 = inlined_call_operand.vmem [shape: f32[32,32], index: 2, kind: input, shape index: {}]   ;;  %s2144_s3 = inlined_call_operand.vmem [shape: f32[1,32], index: 3, kind: input, shape index: {}]   ;;  %s2145_s4 = inlined_call_operand.vmem [shape: f32[32,64], index: 4, kind: input, shape index: {}]   ;;  %s2146_s5 = inlined_call_operand.vmem [shape: f32[1,64], index: 5, kind: input, shape index: {}]   ;;  %s2147_s6 = inlined_call_operand.vmem [shape: f32[32,32], index: 6, kind: input, shape index: {}]   ;;  %s2148_s7 = inlined_call_operand.vmem [shape: f32[1,32], index: 7, kind: input, shape index: {}]   ;;  %s2149_s8 = inlined_call_operand.vmem [shape: f32[1,32], index: 8, kind: input, shape index: {}]   ;;  %s2150_s9 = inlined_call_operand.vmem [shape: f32[1,32], index: 9, kind: input, shape index: {}]   ;;  %s2151_s10 = inlined_call_operand.vmem [shape: f32[16,32], index: 10, kind: output, shape index: {}]  }
   0x1   :  { %s1959_s15 = smov 0  }
   0x2 LB: > { %s32_s16 = sadd.s32 1, %s1884_s14  ;;  %p1657_p0 = scmp.ge.s32.totalorder %s1888_s15, 1  ;;  %s1888_s15 = sphi %s1959_s15, %s20_s15   ;;  %s1884_s14 = sphi %s1957_s14, %s2153_s14   ;;  %s1880_s13 = sphi %s1955_s13, %s2152_s13  }
   0x3   : > { %p34_p1 = scmp.ge.s32.totalorder %s32_s16, 2  ;;  %p338_p2 = scmp.lt.s32.totalorder %s1888_s15, 3 }
   0x5   : > { %s2155_s16 = smov (%p34_p1, %s32_s16), 0  ;;  %p339_p3 = pnand %p1657_p0, %p338_p2 }
   0x6   : > { %v484_v0 = vld [vmem:[%s2145_s4] sm:$0xff] (!%p339_p3)  ;;  %v485_v1 = vld [vmem:[%s2145_s4 + $0x8] sm:$0xff] (!%p339_p3)  ;;  %v1890_v3 = vmov (!%p339_p3), 0.0|0.0   ;;  %v486_v6 = vld [vmem:[%s2145_s4 + $0x10] sm:$0xff] (!%p339_p3)  ;;  %p381_p4 = scmp.lt.s32.totalorder (!%p339_p3), %s1880_s13, 1  ;;  %vm1891_vm0 = vmmov (!%p339_p3), 0  }
   0x7   : > { %342 = sbr.rel (%p339_p3) target bundleno = 2477 (0x9ad), region = 60  ;;  %v397_v2 = vld [vmem:[%s2143_s2] sm:$0xff] (!%p339_p3)  ;;  %1808 = vmatprep.subr.bf16.mxu1 (!%p339_p3), %v1890_v3  ;;  %1802 = vmatprep.subr.bf16.mxu0 (!%p339_p3), %v1890_v3  ;;  %v1809_v4 = vpack.c.bf16 (!%p339_p3), %v485_v1, %v484_v0  ;;  %v398_v5 = vld [vmem:[%s2143_s2 + $0x8] sm:$0xff] (!%p339_p3)  ;;  %v487_v7 = vld [vmem:[%s2145_s4 + $0x18] sm:$0xff] (!%p339_p3)  ;;  %v1892_v11 = vmov (!%p339_p3), 0.0   ;;  %vm408_vm1 = vcmask (!%p339_p3), 261120  }
   0x8   : > { %v1803_v8 = vpack.c.bf16 (!%p339_p3), %v398_v5, %v397_v2  ;;  %v399_v9 = vld [vmem:[%s2143_s2 + $0x10] sm:$0xff] (!%p339_p3)  ;;  %v400_v10 = vld [vmem:[%s2143_s2 + $0x18] sm:$0xff] (!%p339_p3)  ;;  %1739 = vmatprep.mubr.msk.f32.mxu1 (!%p339_p3), %vm1891_vm0, %v1892_v11  ;;  %1728 = vmatprep.mubr.msk.f32.mxu0 (!%p339_p3), %vm1891_vm0, %v1892_v11  ;;  %v1812_v12 = vpack.c.bf16 (!%p339_p3), %v487_v7, %v486_v6  ;;  %v1665_v14 = vld [vmem:[%s2148_s7] ss:$0 sm:$0xff] (!%p339_p3)  ;;  %vm581_vm2 = vcmask (!%p339_p3), 64512   ;;  %s1893_s29 = smov (!%p339_p3), 120  }
   0x9   : > { %1810 = vmatpush3.bf16.msra.mxu1 (!%p339_p3), %v1809_v4  ;;  %v1806_v13 = vpack.c.bf16 (!%p339_p3), %v400_v10, %v399_v9  ;;  %v1663_v18 = vld [vmem:[%s2146_s5] ss:$0 sm:$0xff] (!%p339_p3)  ;;  %s1894_s30 = smov (!%p339_p3), 96   ;;  %s1895_s11 = smov (!%p339_p3), 88   ;;  %v569_v59 = vld [vmem:[%s2147_s6 + $0x8] sm:$0xff] (!%p339_p3) }
   0xa   : > { %1804 = vmatpush3.bf16.msra.mxu0 (!%p339_p3), %v1803_v8  ;;  %1811 = vmatprep.subr.bf16.mxu1 (!%p339_p3), %v1890_v3  ;;  %v1661_v19 = vld [vmem:[%s2144_s3] ss:$0 sm:$0xff] (!%p339_p3)  ;;  %s1896_s12 = smov (!%p339_p3), 112   ;;  %s1898_s21 = smov (!%p339_p3), 104  }
   0xb   : > { %1805 = vmatprep.subr.bf16.mxu0 (!%p339_p3), %v1890_v3  ;;  %v568_v38 = vld [vmem:[%s2147_s6] sm:$0xff] (!%p339_p3)  ;;  %s1899_s24 = smov (!%p339_p3), 72  }
   0xd   : > { %1813 = vmatpush3.bf16.msra.mxu1 (!%p339_p3), %v1812_v12 }
   0xe   : > { %s2157_s13 = smov (!%p381_p4, %s1880_s13), 1  ;;  %1807 = vmatpush3.bf16.msra.mxu0 %v1806_v13  ;;  %1747 = vmatprep.subr.mxu1 %v1892_v11 }
   0xf   : > { %s2005_s17 = sshll.u32 %s2157_s13, 3  ;;  %1742 = vmatprep.subr.mxu0 %v1892_v11 }
  0x10   : > { %s389_s20 = scalar_lea.vmem %s2142_s1, %s2005_s17  ;;  %s384_s25 = scalar_lea.vmem %s2141_s0, %s2005_s17 }
  0x11   : > { %v483_v15 = vld [vmem:[%s389_s20] sm:$0xff]  ;;  %s1897_s20 = smov 80   ;;  %s394_s19 = scalar_lea.vmem %s2151_s10, %s2005_s17 }
  0x12   : > { %v396_v16 = vld [vmem:[%s384_s25] sm:$0xff]  ;;  %1740 = vmatmul.mubr.msk.f32.vlgmr.msra.gmra.mrb[0].mxu1 %vm408_vm1, %v483_v15 }
  0x13   : > { %v579_v17 = vadd.f32 %v1665_v14, %v396_v16  ;;  %1729 = vmatmul.mubr.msk.f32.vlgmr.msra.gmra.mrb[0].mxu0 %vm408_vm1, %v396_v16  ;;  %1749 = vmatprep.mubr.msk.f32.mxu1 %vm1891_vm0, %v1892_v11 }
  0x14   : > { %1744 = vmatprep.mubr.msk.f32.mxu0 %vm1891_vm0, %v1892_v11 }
  0x15   : > { %580 = vst.msk [vmem:[#allocation2] sm:$0xff] %vm408_vm1, %v579_v17  ;;  %v570_v17 = vld [vmem:[%s2147_s6 + $0x10] sm:$0xff] }
  0x1c   : > { %v745_v55 = vld [vmem:[#allocation2] sm:$0xff] }
  0xe5   : > { %v564_v20 = vpop.f32.mrb[0].mxu1 }
  0xe6   : > { %v2033_v21 = vadd.f32 %v1663_v18, %v564_v20  ;;  %v478_v22 = vpop.f32.mrb[0].mxu0  ;;  %v1741_v23 = vpop.f32.mrb[1].mxu1 }
  0xe7   : > { %v479_v24 = vadd.f32 %v1661_v19, %v478_v22  ;;  %v1730_v25 = vpop.f32.mrb[1].mxu0 }
  0xe8   : > { %823 = vrot.lane.b32.xlu1 %v2033_v21, %s1893_s29  ;;  %1743 = vmatpush3.xpose.msk.msra.mxu0 %vm581_vm2, %v2033_v21 }
  0xe9   : > { %v2038_v26 = vmul.f32 0.35355338, %v479_v24  ;;  %1752 = vmatprep.subr.mxu0 %v1892_v11 }
  0xeb   : > { %1745 = vmatmul.mubr.msk.f32.vlgmr.msra.gmra.mrb[2].mxu0 %vm581_vm2, %v2038_v26 }
  0xec   : > { %821 = vrot.lane.b32.xlu1 %v2038_v26, %s1893_s29  ;;  %1754 = vmatprep.mubr.msk.f32.mxu0 %vm1891_vm0, %v1892_v11 }
  0xed   : > { %1753 = vmatpush3.msra.mxu0 %v568_v38 }
  0xee   : > { %1762 = vmatprep.subr.mxu0 %v1892_v11 }
 0x15a   : > { %v824_v34 = vpop.permute.xlu1 %823 }
 0x15e   : > { %v822_v37 = vpop.permute.xlu1 %821 }
 0x1be   : > { %v654_v27 = vpop.f32.mrb[2].mxu0 }
 0x1bf   : > { %v1746_v28 = vpop.f32.mrb[3].mxu0  ;;  %v658_v29 = vsel %vm581_vm2, %v654_v27, -inf }
 0x1c0   : > { %659 = vmax.xlane.f32.xlu0 %v658_v29 }
 0x1d6   : > { %668 = vrot.lane.b32.xlu0 %v2033_v21, %s1894_s30 }
 0x24d   : > { %v660_v30 = vpop.xlane.xlu0 %659 }
 0x24e   : > { %v661_v31 = vsub.f32 %v654_v27, %v660_v30 }
 0x250   : > { %v662_v32 = vmul.f32 1.442695, %v661_v31 }
 0x251   : > { %v669_v33 = vpop.permute.xlu0 %668 }
 0x252   : > { %1848 = vpow2.f32 %v662_v32  ;;  %1748 = vmatpush3.msra.mxu1 %v669_v33 }
 0x253   : > { %1757 = vmatprep.subr.mxu1 %v1892_v11 }
 0x25c   : > { %v1849_v35 = vpop.eup %1848 }
 0x25d   : > { %1750 = vmatmul.mubr.msk.f32.vlgmr.msra.gmra.mrb[2].mxu1 %vm581_vm2, %v1849_v35  ;;  %v664_v36 = vsel %vm581_vm2, %v1849_v35, 0.0 }
 0x25e   : > { %1758 = vmatpush3.xpose.msk.msra.mxu1 %vm581_vm2, %v824_v34  ;;  %665 = vadd.xlane.f32.xlu1 %v664_v36 }
 0x25f   : > { %1759 = vmatprep.mubr.msk.f32.mxu1 %vm1891_vm0, %v1892_v11  ;;  %1767 = vmatprep.subr.mxu1 %v1892_v11 }
 0x261   : > { %1760 = vmatmul.mubr.msk.f32.vlgmr.msra.gmra.mrb[4].mxu1 %vm581_vm2, %v822_v37 }
 0x262   : > { %1769 = vmatprep.mubr.msk.f32.mxu1 %vm1891_vm0, %v1892_v11  ;;  %1768 = vmatpush3.msra.mxu1 %v569_v59 }
 0x263   : > { %1777 = vmatprep.subr.mxu1 %v1892_v11 }
 0x26f   : > { %909 = vrot.lane.b32.xlu1 %v2033_v21, %s1895_s11 }
 0x273   : > { %1062 = vrot.lane.b32.xlu1 %v2038_v26, %s1896_s12 }
 0x2eb   : > { %v666_v39 = vpop.xlane.xlu1 %665 }
 0x2ec   : > { %1850 = vrcp.f32 %v666_v39 }
 0x2ef   : > { %v910_v44 = vpop.permute.xlu1 %909 }
 0x2f3   : > { %v1063_v54 = vpop.permute.xlu1 %1062 }
 0x2f6   : > { %v1851_v40 = vpop.eup %1850 }
 0x330   : > { %v740_v41 = vpop.f32.mrb[2].mxu1 }
 0x331   : > { %v744_v42 = vmul.f32 %v1851_v40, %v740_v41  ;;  %v1751_v43 = vpop.f32.mrb[3].mxu1 }
 0x333   : > { %1755 = vmatmul.mubr.msk.f32.vlgmr.msra.gmra.mrb[4].mxu0 %vm581_vm2, %v744_v42 }
 0x334   : > { %1763 = vmatpush3.msra.mxu0 %v910_v44  ;;  %v895_v45 = vpop.f32.mrb[4].mxu1  ;;  %1764 = vmatprep.mubr.msk.f32.mxu0 %vm1891_vm0, %v1892_v11 }
 0x335   : > { %v1761_v46 = vpop.f32.mrb[5].mxu1  ;;  %v899_v47 = vsel %vm581_vm2, %v895_v45, -inf  ;;  %1772 = vmatprep.subr.mxu0 %v1892_v11 }
 0x336   : > { %900 = vmax.xlane.f32.xlu0 %v899_v47 }
 0x34c   : > { %1064 = vrot.lane.b32.xlu0 %v2033_v21, %s1896_s12 }
 0x3c3   : > { %v901_v48 = vpop.xlane.xlu0 %900 }
 0x3c4   : > { %v902_v49 = vsub.f32 %v895_v45, %v901_v48 }
 0x3c6   : > { %v903_v50 = vmul.f32 1.442695, %v902_v49 }
 0x3c7   : > { %v1065_v52 = vpop.permute.xlu0 %1064 }
 0x3c8   : > { %1852 = vpow2.f32 %v903_v50 }
 0x3d2   : > { %v1853_v51 = vpop.eup %1852 }
 0x3d3   : > { %1765 = vmatmul.mubr.msk.f32.vlgmr.msra.gmra.mrb[6].mxu0 %vm581_vm2, %v1853_v51  ;;  %v905_v53 = vsel %vm581_vm2, %v1853_v51, 0.0 }
 0x3d4   : > { %1773 = vmatpush3.xpose.msk.msra.mxu0 %vm581_vm2, %v1065_v52  ;;  %906 = vadd.xlane.f32.xlu1 %v905_v53 }
 0x3d5   : > { %1774 = vmatprep.mubr.msk.f32.mxu0 %vm1891_vm0, %v1892_v11  ;;  %1782 = vmatprep.subr.mxu0 %v1892_v11 }
 0x3d7   : > { %1775 = vmatmul.mubr.msk.f32.vlgmr.msra.gmra.mrb[8].mxu0 %vm581_vm2, %v1063_v54 }
 0x3d8   : > { %1784 = vmatprep.mubr.msk.f32.mxu0 %vm1891_vm0, %v1892_v11  ;;  %1783 = vmatpush3.msra.mxu0 %v570_v17 }
 0x3d9   : > { %1792 = vmatprep.subr.mxu0 %v1892_v11 }
 0x3e5   : > { %1150 = vrot.lane.b32.xlu1 %v2033_v21, %s1897_s20 }
 0x3e9   : > { %1303 = vrot.lane.b32.xlu1 %v2038_v26, %s1898_s21 }
 0x406   : > { %v815_v56 = vpop.f32.mrb[4].mxu0 }
 0x407   : > { %v819_v57 = vadd.f32 %v815_v56, %v745_v55  ;;  %v1756_v58 = vpop.f32.mrb[5].mxu0  ;;  %v1682_v56 = vld [vmem:[%s2149_s8] ss:$0 sm:$0xff] }
 0x408   : > { %v1683_v58 = vld [vmem:[%s2150_s9] ss:$0 sm:$0xff] }
 0x409   : > { %820 = vst.msk [vmem:[#allocation2] sm:$0xff] %vm408_vm1, %v819_v57 }
 0x410   : > { %v986_v13 = vld [vmem:[#allocation2] sm:$0xff] }
 0x461   : > { %v907_v60 = vpop.xlane.xlu1 %906 }
 0x462   : > { %1854 = vrcp.f32 %v907_v60 }
 0x465   : > { %v1151_v1 = vpop.permute.xlu1 %1150 }
 0x469   : > { %v1304_v12 = vpop.permute.xlu1 %1303 }
 0x46c   : > { %v1855_v61 = vpop.eup %1854 }
 0x4a6   : > { %v981_v62 = vpop.f32.mrb[6].mxu0 }
 0x4a7   : > { %v985_v63 = vmul.f32 %v1855_v61, %v981_v62  ;;  %v1766_v0 = vpop.f32.mrb[7].mxu0 }
 0x4a9   : > { %1770 = vmatmul.mubr.msk.f32.vlgmr.msra.gmra.mrb[6].mxu1 %vm581_vm2, %v985_v63 }
 0x4aa   : > { %1778 = vmatpush3.msra.mxu1 %v1151_v1  ;;  %v1136_v2 = vpop.f32.mrb[8].mxu0  ;;  %1779 = vmatprep.mubr.msk.f32.mxu1 %vm1891_vm0, %v1892_v11 }
 0x4ab   : > { %v1776_v3 = vpop.f32.mrb[9].mxu0  ;;  %v1140_v4 = vsel %vm581_vm2, %v1136_v2, -inf  ;;  %1787 = vmatprep.subr.mxu1 %v1892_v11 }
 0x4ac   : > { %1141 = vmax.xlane.f32.xlu0 %v1140_v4 }
 0x4c2   : > { %1305 = vrot.lane.b32.xlu0 %v2033_v21, %s1898_s21 }
 0x539   : > { %v1142_v5 = vpop.xlane.xlu0 %1141 }
 0x53a   : > { %v1143_v6 = vsub.f32 %v1136_v2, %v1142_v5 }
 0x53c   : > { %v1144_v7 = vmul.f32 1.442695, %v1143_v6 }
 0x53d   : > { %v1306_v9 = vpop.permute.xlu0 %1305 }
 0x53e   : > { %1856 = vpow2.f32 %v1144_v7 }
 0x548   : > { %v1857_v8 = vpop.eup %1856 }
 0x549   : > { %1780 = vmatmul.mubr.msk.f32.vlgmr.msra.gmra.mrb[8].mxu1 %vm581_vm2, %v1857_v8  ;;  %v1146_v10 = vsel %vm581_vm2, %v1857_v8, 0.0 }
 0x54a   : > { %1788 = vmatpush3.xpose.msk.msra.mxu1 %vm581_vm2, %v1306_v9  ;;  %1147 = vadd.xlane.f32.xlu1 %v1146_v10 }
 0x54b   : > { %1789 = vmatprep.mubr.msk.f32.mxu1 %vm1891_vm0, %v1892_v11  ;;  %1797 = vmatprep.subr.mxu1 %v1892_v11 }
 0x54d   : > { %1790 = vmatmul.mubr.msk.f32.vlgmr.msra.gmra.mrb[10].mxu1 %vm581_vm2, %v1304_v12 }
 0x54e   : > { %1799 = vmatprep.mubr.msk.f32.mxu1 %vm1891_vm0, %v1892_v11 }
 0x55b   : > { %1391 = vrot.lane.b32.xlu1 %v2033_v21, %s1899_s24 }
 0x57c   : > { %v1056_v14 = vpop.f32.mrb[6].mxu1 }
 0x57d   : > { %v1060_v15 = vadd.f32 %v1056_v14, %v986_v13  ;;  %v1771_v16 = vpop.f32.mrb[7].mxu1 }
 0x57f   : > { %1061 = vst.msk [vmem:[#allocation2] sm:$0xff] %vm408_vm1, %v1060_v15 }
 0x586   : > { %v1227_v32 = vld [vmem:[#allocation2] sm:$0xff] }
 0x5d7   : > { %v1148_v18 = vpop.xlane.xlu1 %1147 }
 0x5d8   : > { %1858 = vrcp.f32 %v1148_v18 }
 0x5db   : > { %v1392_v21 = vpop.permute.xlu1 %1391 }
 0x5e2   : > { %v1859_v19 = vpop.eup %1858 }
 0x61c   : > { %v1222_v20 = vpop.f32.mrb[8].mxu1 }
 0x61d   : > { %v1226_v22 = vmul.f32 %v1859_v19, %v1222_v20  ;;  %v1781_v23 = vpop.f32.mrb[9].mxu1 }
 0x61f   : > { %1785 = vmatmul.mubr.msk.f32.vlgmr.msra.gmra.mrb[10].mxu0 %vm581_vm2, %v1226_v22 }
 0x620   : > { %1793 = vmatpush3.msra.mxu0 %v1392_v21  ;;  %v1377_v24 = vpop.f32.mrb[10].mxu1  ;;  %1794 = vmatprep.mubr.msk.f32.mxu0 %vm1891_vm0, %v1892_v11  ;;  %v571_v11 = vld [vmem:[%s2147_s6 + $0x18] sm:$0xff] }
 0x621   : > { %v1791_v25 = vpop.f32.mrb[11].mxu1  ;;  %v1381_v26 = vsel %vm581_vm2, %v1377_v24, -inf  ;;  %1798 = vmatpush3.msra.mxu1 %v571_v11 }
 0x622   : > { %1382 = vmax.xlane.f32.xlu0 %v1381_v26 }
 0x6af   : > { %v1383_v27 = vpop.xlane.xlu0 %1382 }
 0x6b0   : > { %v1384_v28 = vsub.f32 %v1377_v24, %v1383_v27 }
 0x6b2   : > { %v1385_v29 = vmul.f32 1.442695, %v1384_v28 }
 0x6b4   : > { %1860 = vpow2.f32 %v1385_v29 }
 0x6be   : > { %v1861_v30 = vpop.eup %1860 }
 0x6bf   : > { %1795 = vmatmul.mubr.msk.f32.vlgmr.msra.gmra.mrb[12].mxu0 %vm581_vm2, %v1861_v30  ;;  %v1387_v31 = vsel %vm581_vm2, %v1861_v30, 0.0 }
 0x6c0   : > { %1388 = vadd.xlane.f32.xlu0 %v1387_v31 }
 0x6f2   : > { %v1297_v33 = vpop.f32.mrb[10].mxu0 }
 0x6f3   : > { %v1301_v34 = vadd.f32 %v1297_v33, %v1227_v32  ;;  %v1786_v35 = vpop.f32.mrb[11].mxu0 }
 0x6f5   : > { %1302 = vst.msk [vmem:[#allocation2] sm:$0xff] %vm408_vm1, %v1301_v34 }
 0x6fc   : > { %v1468_v41 = vld [vmem:[#allocation2] sm:$0xff] }
 0x74d   : > { %v1389_v36 = vpop.xlane.xlu0 %1388 }
 0x74e   : > { %1862 = vrcp.f32 %v1389_v36 }
 0x758   : > { %v1863_v37 = vpop.eup %1862 }
 0x792   : > { %v1463_v38 = vpop.f32.mrb[12].mxu0 }
 0x793   : > { %v1467_v39 = vmul.f32 %v1863_v37, %v1463_v38  ;;  %v1796_v40 = vpop.f32.mrb[13].mxu0 }
 0x795   : > { %1800 = vmatmul.mubr.msk.f32.vlgmr.msra.gmra.mrb[12].mxu1 %vm581_vm2, %v1467_v39 }
 0x868   : > { %v1538_v42 = vpop.f32.mrb[12].mxu1 }
 0x869   : > { %v1542_v43 = vadd.f32 %v1538_v42, %v1468_v41  ;;  %v1801_v44 = vpop.f32.mrb[13].mxu1 }
 0x86b   : > { %1543 = vst.msk [vmem:[#allocation2] sm:$0xff] %vm408_vm1, %v1542_v43 }
 0x872   : > { %v1544_v45 = vld [vmem:[#allocation2] sm:$0xff] }
 0x873   : > { %v1545_v46 = vsel %vm408_vm1, %v1544_v45, 0.0 }
 0x874   : > { %1546 = vadd.xlane.f32.xlu0 %v1545_v46 }
 0x901   : > { %v1547_v47 = vpop.xlane.xlu0 %1546 }
 0x902   : > { %v1549_v48 = vmul.f32 0.03125, %v1547_v47 }
 0x904   : > { %v1550_v49 = vsub.f32 %v1544_v45, %v1549_v48 }
 0x906   : > { %v1551_v50 = vmul.f32 %v1550_v49, %v1550_v49 }
 0x908   : > { %v1552_v51 = vsel %vm408_vm1, %v1551_v50, 0.0 }
 0x909   : > { %1553 = vadd.xlane.f32.xlu0 %v1552_v51 }
 0x996   : > { %v1554_v52 = vpop.xlane.xlu0 %1553 }
 0x997   : > { %v1555_v53 = vmul.f32 0.03125, %v1554_v52 }
 0x999   : > { %v1556_v54 = vadd.f32 1e-05, %v1555_v53 }
 0x99b   : > { %1864 = vrsqrt.f32 %v1556_v54 }
 0x9a5   : > { %v1865_v55 = vpop.eup %1864 }
 0x9a6   : > { %v1558_v57 = vmul.f32 %v1865_v55, %v1550_v49 }
 0x9a8   : > { %v1566_v59 = vmul.f32 %v1682_v56, %v1558_v57 }
 0x9aa   : > { %v1574_v60 = vadd.f32 %v1683_v58, %v1566_v59 }
 0x9ac   : > { %1575 = vst.msk [vmem:[%s394_s19] sm:$0xff] %vm408_vm1, %v1574_v60 }
 0x9ad PF: > { %s20_s15 = sadd.s32 1, %s1888_s15   ;;  %s2152_s13 = smov %s1884_s14 }
 0x9ae   : > { %p17_p5 = scmp.ge.s32.totalorder %s20_s15, 4   ;;  %s2153_s14 = smov %s2155_s16 }
 0x9b0   :  { %19 = sbr.rel (!%p17_p5) target bundleno = 2 (0x2), region = 93 }

// kernel: encoder_decoder_forward.23
= control target key start
LH: loop header
LB: loop body
LE: loop exit
PB: predicated region body
PF: predicated region fallthrough
CT: control target
= control target key end

     0   :  { %vm17_vm0 = vcmask 261120   ;;  %s167_s0 = inlined_call_operand.vmem [shape: f32[16,32], index: 0, kind: input, shape index: {}]   ;;  %s168_s1 = inlined_call_operand.vmem [shape: f32[1,32], index: 1, kind: input, shape index: {}]   ;;  %s169_s2 = inlined_call_operand.vmem [shape: f32[1,32], index: 2, kind: input, shape index: {}]   ;;  %s170_s3 = inlined_call_operand.hbm [shape: f32[16,32], index: 3, kind: output, shape index: {}]  }
   0x1   :  { %v15_v0 = vld [vmem:[%s167_s0] sm:$0xff]  ;;  %v16_v1 = vld [vmem:[%s167_s0 + $0x8] sm:$0xff] }
   0x2   :  { %8 = vsyncpa [#allocation3], 0  ;;  %v18_v2 = vsel %vm17_vm0, %v15_v0, 0.0  ;;  %v21_v3 = vsel %vm17_vm0, %v16_v1, 0.0  ;;  %v81_v21 = vld [vmem:[%s168_s1] ss:$0 sm:$0xff] }
   0x3   :  { %19 = vadd.xlane.f32.xlu0 %v18_v2  ;;  %v82_v23 = vld [vmem:[%s169_s2] ss:$0 sm:$0xff]  ;;  %s114_s19 = smov [#allocation2]  }
   0x4   :  { %s70_s20 = sshll.u32 %s114_s19, 4  ;;  %s71_s20 = int_to_ptr.vmem [resolvable:$true] %s70_s20 }
   0x5   :  { %s90_s21 = scalar_lea.vmem %s71_s20, 256  ;;  %p95_p1 = scmp.lt.s32.totalorder %s71_s20, %s71_s20 }
   0x6   :  { %p91_p0 = scmp.ne.s32.totalorder %s71_s20, %s90_s21  ;;  %p96_p2 = scmp.lt.s32.totalorder %s90_s21, %s90_s21 }
   0x7   :  { %22 = vadd.xlane.f32.xlu0 %v21_v3 }
   0x8   :  { %p97_p3 = por %p96_p2, %p95_p1 }
   0xa   :  { %p98_p4 = pnand %p97_p3, %p91_p0 }
  0x90   :  { %v20_v4 = vpop.xlane.xlu0 %19 }
  0x91   :  { %v25_v5 = vmul.f32 0.03125, %v20_v4 }
  0x93   :  { %v27_v6 = vsub.f32 %v15_v0, %v25_v5 }
  0x94   :  { %v23_v7 = vpop.xlane.xlu0 %22 }
  0x95   :  { %v26_v8 = vmul.f32 0.03125, %v23_v7  ;;  %v29_v9 = vmul.f32 %v27_v6, %v27_v6 }
  0x97   :  { %v28_v10 = vsub.f32 %v16_v1, %v26_v8  ;;  %v31_v11 = vsel %vm17_vm0, %v29_v9, 0.0 }
  0x98   :  { %32 = vadd.xlane.f32.xlu1 %v31_v11 }
  0x99   :  { %v30_v12 = vmul.f32 %v28_v10, %v28_v10 }
  0x9b   :  { %v34_v13 = vsel %vm17_vm0, %v30_v12, 0.0 }
  0x9c   :  { %35 = vadd.xlane.f32.xlu1 %v34_v13 }
 0x125   :  { %v33_v14 = vpop.xlane.xlu1 %32 }
 0x126   :  { %v37_v15 = vmul.f32 0.03125, %v33_v14 }
 0x128   :  { %v39_v16 = vadd.f32 1e-05, %v37_v15 }
 0x129   :  { %v36_v17 = vpop.xlane.xlu1 %35 }
 0x12a   :  { %86 = vrsqrt.f32 %v39_v16  ;;  %v38_v18 = vmul.f32 0.03125, %v36_v17 }
 0x12c   :  { %v40_v19 = vadd.f32 1e-05, %v38_v18 }
 0x12e   :  { %88 = vrsqrt.f32 %v40_v19 }
 0x134   :  { %v87_v20 = vpop.eup %86 }
 0x135   :  { %v43_v22 = vmul.f32 %v87_v20, %v27_v6 }
 0x137   :  { %v52_v24 = vmul.f32 %v81_v21, %v43_v22 }
 0x138   :  { %v89_v25 = vpop.eup %88 }
 0x139   :  { %v44_v26 = vmul.f32 %v89_v25, %v28_v10  ;;  %v61_v27 = vadd.f32 %v82_v23, %v52_v24 }
 0x13b   :  { %v53_v28 = vmul.f32 %v81_v21, %v44_v26  ;;  %63 = vst.msk [vmem:[#allocation2] sm:$0xff] %vm17_vm0, %v61_v27 }
 0x13d   :  { %v62_v29 = vadd.f32 %v82_v23, %v53_v28 }
 0x13f   :  { %64 = vst.msk [vmem:[#allocation2 + $0x8] sm:$0xff] %vm17_vm0, %v62_v29 }
 0x140   :  { %101 = shalt.err (!%p98_p4)
}
 0x141   :  { %s102_s22 = scalar_lea.hbm %s170_s3, 256 }
 0x142   :  { %p103_p5 = scmp.ne.s32.totalorder %s170_s3, %s102_s22  ;;  %p106_p6 = scmp.lt.u32.totalorder %s102_s22, %s170_s3 }
 0x144   :  { %p108_p7 = pnand %p106_p6, %p103_p5 }
 0x146   :  { %111 = shalt.err (!%p108_p7)
}
 0x147   :  { %s115_s27 = smov 128   ;;  %s116_s28 = smov 8  }
 0x148   :  { %76 = dma.vmem_to_hbm [thread:$0]  %s71_s20, 256, %s170_s3, [#allocation3], %s115_s27, %s115_s27, %s116_s28  }
 0x149   :  { %112 = dma.done.wait [#allocation3], 256  }
 0x14a   :  { %113 = vsyncadd [#allocation3], 4294967040 }
 0x14b   :  { %80 = vsyncpa [#allocation3], 1 }

// kernel: encoder_decoder_forward.17
= control target key start
LH: loop header
LB: loop body
LE: loop exit
PB: predicated region body
PF: predicated region fallthrough
CT: control target
= control target key end

     0   :  { %s1964_s13 = smov 0   ;;  %s1966_s14 = smov 0   ;;  %s2157_s0 = inlined_call_operand.vmem [shape: f32[16,32], index: 0, kind: input, shape index: {}, may-alias: {0,1}]   ;;  %s2158_s1 = inlined_call_operand.vmem [shape: f32[16,32], index: 1, kind: input, shape index: {}, may-alias: {0,1}]   ;;  %s2159_s2 = inlined_call_operand.vmem [shape: f32[32,32], index: 2, kind: input, shape index: {}]   ;;  %s2160_s3 = inlined_call_operand.vmem [shape: f32[1,32], index: 3, kind: input, shape index: {}]   ;;  %s2161_s4 = inlined_call_operand.vmem [shape: f32[32,64], index: 4, kind: input, shape index: {}]   ;;  %s2162_s5 = inlined_call_operand.vmem [shape: f32[1,64], index: 5, kind: input, shape index: {}]   ;;  %s2163_s6 = inlined_call_operand.vmem [shape: f32[32,32], index: 6, kind: input, shape index: {}]   ;;  %s2164_s7 = inlined_call_operand.vmem [shape: f32[1,32], index: 7, kind: input, shape index: {}]   ;;  %s2165_s8 = inlined_call_operand.vmem [shape: f32[1,32], index: 8, kind: input, shape index: {}]   ;;  %s2166_s9 = inlined_call_operand.vmem [shape: f32[1,32], index: 9, kind: input, shape index: {}]   ;;  %s2167_s10 = inlined_call_operand.vmem [shape: f32[16,32], index: 10, kind: output, shape index: {}]  }
   0x1   :  { %s1968_s15 = smov 0  }
   0x2 LB: > { %s32_s16 = sadd.s32 1, %s1893_s14  ;;  %p1666_p0 = scmp.ge.s32.totalorder %s1897_s15, 1  ;;  %s1897_s15 = sphi %s1968_s15, %s20_s15   ;;  %s1893_s14 = sphi %s1966_s14, %s2169_s14   ;;  %s1889_s13 = sphi %s1964_s13, %s2168_s13  }
   0x3   : > { %p34_p1 = scmp.ge.s32.totalorder %s32_s16, 2  ;;  %p338_p2 = scmp.lt.s32.totalorder %s1897_s15, 3 }
   0x5   : > { %s2171_s16 = smov (%p34_p1, %s32_s16), 0  ;;  %p339_p3 = pnand %p1666_p0, %p338_p2 }
   0x6   : > { %v484_v0 = vld [vmem:[%s2161_s4] sm:$0xff] (!%p339_p3)  ;;  %v485_v1 = vld [vmem:[%s2161_s4 + $0x8] sm:$0xff] (!%p339_p3)  ;;  %v1899_v3 = vmov (!%p339_p3), 0.0|0.0   ;;  %v486_v6 = vld [vmem:[%s2161_s4 + $0x10] sm:$0xff] (!%p339_p3)  ;;  %p381_p4 = scmp.lt.s32.totalorder (!%p339_p3), %s1889_s13, 1  ;;  %vm1900_vm0 = vmmov (!%p339_p3), 0   ;;  %v573_v27 = vlaneseq (!%p339_p3) }
   0x7   : > { %342 = sbr.rel (%p339_p3) target bundleno = 2485 (0x9b5), region = 60  ;;  %v397_v2 = vld [vmem:[%s2159_s2] sm:$0xff] (!%p339_p3)  ;;  %1817 = vmatprep.subr.bf16.mxu1 (!%p339_p3), %v1899_v3  ;;  %1811 = vmatprep.subr.bf16.mxu0 (!%p339_p3), %v1899_v3  ;;  %v1818_v4 = vpack.c.bf16 (!%p339_p3), %v485_v1, %v484_v0  ;;  %v398_v5 = vld [vmem:[%s2159_s2 + $0x8] sm:$0xff] (!%p339_p3)  ;;  %v487_v7 = vld [vmem:[%s2161_s4 + $0x18] sm:$0xff] (!%p339_p3)  ;;  %v1901_v11 = vmov (!%p339_p3), 0.0   ;;  %vm408_vm1 = vcmask (!%p339_p3), 261120  }
   0x8   : > { %v1812_v8 = vpack.c.bf16 (!%p339_p3), %v398_v5, %v397_v2  ;;  %v399_v9 = vld [vmem:[%s2159_s2 + $0x10] sm:$0xff] (!%p339_p3)  ;;  %v400_v10 = vld [vmem:[%s2159_s2 + $0x18] sm:$0xff] (!%p339_p3)  ;;  %1748 = vmatprep.mubr.msk.f32.mxu1 (!%p339_p3), %vm1900_vm0, %v1901_v11  ;;  %1737 = vmatprep.mubr.msk.f32.mxu0 (!%p339_p3), %vm1900_vm0, %v1901_v11  ;;  %v1821_v12 = vpack.c.bf16 (!%p339_p3), %v487_v7, %v486_v6  ;;  %v1674_v14 = vld [vmem:[%s2164_s7] ss:$0 sm:$0xff] (!%p339_p3)  ;;  %vm590_vm2 = vcmask (!%p339_p3), 64512   ;;  %s1902_s29 = smov (!%p339_p3), 120  }
   0x9   : > { %1819 = vmatpush3.bf16.msra.mxu1 (!%p339_p3), %v1818_v4  ;;  %v1815_v13 = vpack.c.bf16 (!%p339_p3), %v400_v10, %v399_v9  ;;  %v1672_v18 = vld [vmem:[%s2162_s5] ss:$0 sm:$0xff] (!%p339_p3)  ;;  %v574_v28 = vshrl.u32 (!%p339_p3), %v573_v27, 7  ;;  %v578_v29 = vand.u32 (!%p339_p3), 127, %v573_v27  ;;  %s1903_s30 = smov (!%p339_p3), 96   ;;  %s1904_s11 = smov (!%p339_p3), 88  }
   0xa   : > { %1813 = vmatpush3.bf16.msra.mxu0 (!%p339_p3), %v1812_v8  ;;  %1820 = vmatprep.subr.bf16.mxu1 (!%p339_p3), %v1899_v3  ;;  %v1670_v19 = vld [vmem:[%s2160_s3] ss:$0 sm:$0xff] (!%p339_p3)  ;;  %s1905_s12 = smov (!%p339_p3), 112   ;;  %s1907_s21 = smov (!%p339_p3), 104   ;;  %v569_v1 = vld [vmem:[%s2163_s6 + $0x8] sm:$0xff] (!%p339_p3) }
   0xb   : > { %1814 = vmatprep.subr.bf16.mxu0 (!%p339_p3), %v1899_v3  ;;  %vm579_vm3 = vcmp.gt.s32.totalorder (!%p339_p3), %v578_v29, %v574_v28  ;;  %v568_v43 = vld [vmem:[%s2163_s6] sm:$0xff] (!%p339_p3)  ;;  %s1908_s24 = smov (!%p339_p3), 72  }
   0xc   : > { %v2056_v30 = vsel (!%p339_p3), %vm579_vm3, -1e+30, %v1901_v11 }
   0xd   : > { %1822 = vmatpush3.bf16.msra.mxu1 (!%p339_p3), %v1821_v12 }
   0xe   : > { %s2173_s13 = smov (!%p381_p4, %s1889_s13), 1  ;;  %1816 = vmatpush3.bf16.msra.mxu0 %v1815_v13  ;;  %1756 = vmatprep.subr.mxu1 %v1901_v11 }
   0xf   : > { %s2014_s17 = sshll.u32 %s2173_s13, 3  ;;  %1751 = vmatprep.subr.mxu0 %v1901_v11 }
  0x10   : > { %s389_s20 = scalar_lea.vmem %s2158_s1, %s2014_s17  ;;  %s384_s25 = scalar_lea.vmem %s2157_s0, %s2014_s17 }
  0x11   : > { %v483_v15 = vld [vmem:[%s389_s20] sm:$0xff]  ;;  %s1906_s20 = smov 80   ;;  %s394_s19 = scalar_lea.vmem %s2167_s10, %s2014_s17 }
  0x12   : > { %v396_v16 = vld [vmem:[%s384_s25] sm:$0xff]  ;;  %1749 = vmatmul.mubr.msk.f32.vlgmr.msra.gmra.mrb[0].mxu1 %vm408_vm1, %v483_v15 }
  0x13   : > { %v588_v17 = vadd.f32 %v1674_v14, %v396_v16  ;;  %1738 = vmatmul.mubr.msk.f32.vlgmr.msra.gmra.mrb[0].mxu0 %vm408_vm1, %v396_v16  ;;  %1758 = vmatprep.mubr.msk.f32.mxu1 %vm1900_vm0, %v1901_v11 }
  0x14   : > { %1753 = vmatprep.mubr.msk.f32.mxu0 %vm1900_vm0, %v1901_v11 }
  0x15   : > { %589 = vst.msk [vmem:[#allocation2] sm:$0xff] %vm408_vm1, %v588_v17 }
  0x1c   : > { %v754_v61 = vld [vmem:[#allocation2] sm:$0xff] }
  0xe5   : > { %v564_v20 = vpop.f32.mrb[0].mxu1 }
  0xe6   : > { %v2042_v21 = vadd.f32 %v1672_v18, %v564_v20  ;;  %v478_v22 = vpop.f32.mrb[0].mxu0  ;;  %v1750_v23 = vpop.f32.mrb[1].mxu1 }
  0xe7   : > { %v479_v24 = vadd.f32 %v1670_v19, %v478_v22  ;;  %v1739_v25 = vpop.f32.mrb[1].mxu0 }
  0xe8   : > { %832 = vrot.lane.b32.xlu1 %v2042_v21, %s1902_s29  ;;  %1752 = vmatpush3.xpose.msk.msra.mxu0 %vm590_vm2, %v2042_v21  ;;  %v570_v25 = vld [vmem:[%s2163_s6 + $0x10] sm:$0xff] }
  0xe9   : > { %v2047_v26 = vmul.f32 0.35355338, %v479_v24  ;;  %1761 = vmatprep.subr.mxu0 %v1901_v11 }
  0xeb   : > { %1754 = vmatmul.mubr.msk.f32.vlgmr.msra.gmra.mrb[2].mxu0 %vm590_vm2, %v2047_v26 }
  0xec   : > { %830 = vrot.lane.b32.xlu1 %v2047_v26, %s1902_s29  ;;  %1763 = vmatprep.mubr.msk.f32.mxu0 %vm1900_vm0, %v1901_v11 }
  0xed   : > { %1762 = vmatpush3.msra.mxu0 %v568_v43 }
  0xee   : > { %1771 = vmatprep.subr.mxu0 %v1901_v11 }
 0x15a   : > { %v833_v39 = vpop.permute.xlu1 %832 }
 0x15e   : > { %v831_v42 = vpop.permute.xlu1 %830 }
 0x1be   : > { %v663_v31 = vpop.f32.mrb[2].mxu0 }
 0x1bf   : > { %v664_v32 = vadd.f32 %v663_v31, %v2056_v30  ;;  %v1755_v33 = vpop.f32.mrb[3].mxu0 }
 0x1c1   : > { %v667_v34 = vsel %vm590_vm2, %v664_v32, -inf }
 0x1c2   : > { %668 = vmax.xlane.f32.xlu0 %v667_v34 }
 0x1d8   : > { %677 = vrot.lane.b32.xlu0 %v2042_v21, %s1903_s30 }
 0x24f   : > { %v669_v35 = vpop.xlane.xlu0 %668 }
 0x250   : > { %v670_v36 = vsub.f32 %v664_v32, %v669_v35 }
 0x252   : > { %v671_v37 = vmul.f32 1.442695, %v670_v36 }
 0x253   : > { %v678_v38 = vpop.permute.xlu0 %677 }
 0x254   : > { %1857 = vpow2.f32 %v671_v37  ;;  %1757 = vmatpush3.msra.mxu1 %v678_v38 }
 0x255   : > { %1766 = vmatprep.subr.mxu1 %v1901_v11 }
 0x25e   : > { %v1858_v40 = vpop.eup %1857 }
 0x25f   : > { %1759 = vmatmul.mubr.msk.f32.vlgmr.msra.gmra.mrb[2].mxu1 %vm590_vm2, %v1858_v40  ;;  %v673_v41 = vsel %vm590_vm2, %v1858_v40, 0.0 }
 0x260   : > { %1767 = vmatpush3.xpose.msk.msra.mxu1 %vm590_vm2, %v833_v39  ;;  %674 = vadd.xlane.f32.xlu1 %v673_v41 }
 0x261   : > { %1768 = vmatprep.mubr.msk.f32.mxu1 %vm1900_vm0, %v1901_v11  ;;  %1776 = vmatprep.subr.mxu1 %v1901_v11 }
 0x263   : > { %1769 = vmatmul.mubr.msk.f32.vlgmr.msra.gmra.mrb[4].mxu1 %vm590_vm2, %v831_v42 }
 0x264   : > { %1778 = vmatprep.mubr.msk.f32.mxu1 %vm1900_vm0, %v1901_v11  ;;  %1777 = vmatpush3.msra.mxu1 %v569_v1 }
 0x265   : > { %1786 = vmatprep.subr.mxu1 %v1901_v11 }
 0x271   : > { %918 = vrot.lane.b32.xlu1 %v2042_v21, %s1904_s11 }
 0x275   : > { %1071 = vrot.lane.b32.xlu1 %v2047_v26, %s1905_s12 }
 0x2ed   : > { %v675_v44 = vpop.xlane.xlu1 %674 }
 0x2ee   : > { %1859 = vrcp.f32 %v675_v44 }
 0x2f1   : > { %v919_v49 = vpop.permute.xlu1 %918 }
 0x2f5   : > { %v1072_v60 = vpop.permute.xlu1 %1071 }
 0x2f8   : > { %v1860_v45 = vpop.eup %1859 }
 0x332   : > { %v749_v46 = vpop.f32.mrb[2].mxu1 }
 0x333   : > { %v753_v47 = vmul.f32 %v1860_v45, %v749_v46  ;;  %v1760_v48 = vpop.f32.mrb[3].mxu1 }
 0x335   : > { %1764 = vmatmul.mubr.msk.f32.vlgmr.msra.gmra.mrb[4].mxu0 %vm590_vm2, %v753_v47 }
 0x336   : > { %1772 = vmatpush3.msra.mxu0 %v919_v49  ;;  %v904_v50 = vpop.f32.mrb[4].mxu1  ;;  %1773 = vmatprep.mubr.msk.f32.mxu0 %vm1900_vm0, %v1901_v11 }
 0x337   : > { %v905_v51 = vadd.f32 %v904_v50, %v2056_v30  ;;  %v1770_v52 = vpop.f32.mrb[5].mxu1  ;;  %1781 = vmatprep.subr.mxu0 %v1901_v11 }
 0x339   : > { %v908_v53 = vsel %vm590_vm2, %v905_v51, -inf }
 0x33a   : > { %909 = vmax.xlane.f32.xlu0 %v908_v53 }
 0x350   : > { %1073 = vrot.lane.b32.xlu0 %v2042_v21, %s1905_s12 }
 0x3c7   : > { %v910_v54 = vpop.xlane.xlu0 %909 }
 0x3c8   : > { %v911_v55 = vsub.f32 %v905_v51, %v910_v54 }
 0x3ca   : > { %v912_v56 = vmul.f32 1.442695, %v911_v55 }
 0x3cb   : > { %v1074_v58 = vpop.permute.xlu0 %1073 }
 0x3cc   : > { %1861 = vpow2.f32 %v912_v56 }
 0x3d6   : > { %v1862_v57 = vpop.eup %1861 }
 0x3d7   : > { %1774 = vmatmul.mubr.msk.f32.vlgmr.msra.gmra.mrb[6].mxu0 %vm590_vm2, %v1862_v57  ;;  %v914_v59 = vsel %vm590_vm2, %v1862_v57, 0.0 }
 0x3d8   : > { %1782 = vmatpush3.xpose.msk.msra.mxu0 %vm590_vm2, %v1074_v58  ;;  %915 = vadd.xlane.f32.xlu1 %v914_v59 }
 0x3d9   : > { %1783 = vmatprep.mubr.msk.f32.mxu0 %vm1900_vm0, %v1901_v11  ;;  %1791 = vmatprep.subr.mxu0 %v1901_v11 }
 0x3db   : > { %1784 = vmatmul.mubr.msk.f32.vlgmr.msra.gmra.mrb[8].mxu0 %vm590_vm2, %v1072_v60 }
 0x3dc   : > { %1793 = vmatprep.mubr.msk.f32.mxu0 %vm1900_vm0, %v1901_v11  ;;  %1792 = vmatpush3.msra.mxu0 %v570_v25 }
 0x3dd   : > { %1801 = vmatprep.subr.mxu0 %v1901_v11 }
 0x3e9   : > { %1159 = vrot.lane.b32.xlu1 %v2042_v21, %s1906_s20 }
 0x3ed   : > { %1312 = vrot.lane.b32.xlu1 %v2047_v26, %s1907_s21 }
 0x408   : > { %v824_v62 = vpop.f32.mrb[4].mxu0 }
 0x409   : > { %v828_v63 = vadd.f32 %v824_v62, %v754_v61  ;;  %v1765_v0 = vpop.f32.mrb[5].mxu0 }
 0x40a   : > { %v1691_v0 = vld [vmem:[%s2165_s8] ss:$0 sm:$0xff] }
 0x40b   : > { %829 = vst.msk [vmem:[#allocation2] sm:$0xff] %vm408_vm1, %v828_v63 }
 0x412   : > { %v995_v20 = vld [vmem:[#allocation2] sm:$0xff] }
 0x465   : > { %v916_v2 = vpop.xlane.xlu1 %915 }
 0x466   : > { %1863 = vrcp.f32 %v916_v2  ;;  %v1692_v2 = vld [vmem:[%s2166_s9] ss:$0 sm:$0xff] }
 0x469   : > { %v1160_v7 = vpop.permute.xlu1 %1159 }
 0x46d   : > { %v1313_v19 = vpop.permute.xlu1 %1312 }
 0x470   : > { %v1864_v3 = vpop.eup %1863 }
 0x4aa   : > { %v990_v4 = vpop.f32.mrb[6].mxu0 }
 0x4ab   : > { %v994_v5 = vmul.f32 %v1864_v3, %v990_v4  ;;  %v1775_v6 = vpop.f32.mrb[7].mxu0 }
 0x4ad   : > { %1779 = vmatmul.mubr.msk.f32.vlgmr.msra.gmra.mrb[6].mxu1 %vm590_vm2, %v994_v5 }
 0x4ae   : > { %1787 = vmatpush3.msra.mxu1 %v1160_v7  ;;  %v1145_v8 = vpop.f32.mrb[8].mxu0  ;;  %1788 = vmatprep.mubr.msk.f32.mxu1 %vm1900_vm0, %v1901_v11 }
 0x4af   : > { %v1146_v9 = vadd.f32 %v1145_v8, %v2056_v30  ;;  %v1785_v10 = vpop.f32.mrb[9].mxu0  ;;  %1796 = vmatprep.subr.mxu1 %v1901_v11 }
 0x4b1   : > { %v1149_v12 = vsel %vm590_vm2, %v1146_v9, -inf }
 0x4b2   : > { %1150 = vmax.xlane.f32.xlu0 %v1149_v12 }
 0x4c8   : > { %1314 = vrot.lane.b32.xlu0 %v2042_v21, %s1907_s21 }
 0x53f   : > { %v1151_v13 = vpop.xlane.xlu0 %1150 }
 0x540   : > { %v1152_v14 = vsub.f32 %v1146_v9, %v1151_v13 }
 0x542   : > { %v1153_v15 = vmul.f32 1.442695, %v1152_v14 }
 0x543   : > { %v1315_v17 = vpop.permute.xlu0 %1314 }
 0x544   : > { %1865 = vpow2.f32 %v1153_v15 }
 0x54e   : > { %v1866_v16 = vpop.eup %1865 }
 0x54f   : > { %1789 = vmatmul.mubr.msk.f32.vlgmr.msra.gmra.mrb[8].mxu1 %vm590_vm2, %v1866_v16  ;;  %v1155_v18 = vsel %vm590_vm2, %v1866_v16, 0.0 }
 0x550   : > { %1797 = vmatpush3.xpose.msk.msra.mxu1 %vm590_vm2, %v1315_v17  ;;  %1156 = vadd.xlane.f32.xlu1 %v1155_v18 }
 0x551   : > { %1798 = vmatprep.mubr.msk.f32.mxu1 %vm1900_vm0, %v1901_v11  ;;  %1806 = vmatprep.subr.mxu1 %v1901_v11 }
 0x553   : > { %1799 = vmatmul.mubr.msk.f32.vlgmr.msra.gmra.mrb[10].mxu1 %vm590_vm2, %v1313_v19 }
 0x554   : > { %1808 = vmatprep.mubr.msk.f32.mxu1 %vm1900_vm0, %v1901_v11 }
 0x561   : > { %1400 = vrot.lane.b32.xlu1 %v2042_v21, %s1908_s24 }
 0x580   : > { %v1065_v22 = vpop.f32.mrb[6].mxu1 }
 0x581   : > { %v1069_v23 = vadd.f32 %v1065_v22, %v995_v20  ;;  %v1780_v24 = vpop.f32.mrb[7].mxu1 }
 0x583   : > { %1070 = vst.msk [vmem:[#allocation2] sm:$0xff] %vm408_vm1, %v1069_v23 }
 0x58a   : > { %v1236_v41 = vld [vmem:[#allocation2] sm:$0xff] }
 0x5dd   : > { %v1157_v26 = vpop.xlane.xlu1 %1156 }
 0x5de   : > { %1867 = vrcp.f32 %v1157_v26 }
 0x5e1   : > { %v1401_v21 = vpop.permute.xlu1 %1400 }
 0x5e8   : > { %v1868_v27 = vpop.eup %1867 }
 0x622   : > { %v1231_v28 = vpop.f32.mrb[8].mxu1 }
 0x623   : > { %v1235_v29 = vmul.f32 %v1868_v27, %v1231_v28  ;;  %v1790_v31 = vpop.f32.mrb[9].mxu1 }
 0x625   : > { %1794 = vmatmul.mubr.msk.f32.vlgmr.msra.gmra.mrb[10].mxu0 %vm590_vm2, %v1235_v29 }
 0x626   : > { %1802 = vmatpush3.msra.mxu0 %v1401_v21  ;;  %v1386_v32 = vpop.f32.mrb[10].mxu1  ;;  %1803 = vmatprep.mubr.msk.f32.mxu0 %vm1900_vm0, %v1901_v11 }
 0x627   : > { %v1387_v33 = vadd.f32 %v1386_v32, %v2056_v30  ;;  %v1800_v34 = vpop.f32.mrb[11].mxu1  ;;  %v571_v30 = vld [vmem:[%s2163_s6 + $0x18] sm:$0xff] }
 0x628   : > { %1807 = vmatpush3.msra.mxu1 %v571_v30 }
 0x629   : > { %v1390_v35 = vsel %vm590_vm2, %v1387_v33, -inf }
 0x62a   : > { %1391 = vmax.xlane.f32.xlu0 %v1390_v35 }
 0x6b7   : > { %v1392_v36 = vpop.xlane.xlu0 %1391 }
 0x6b8   : > { %v1393_v37 = vsub.f32 %v1387_v33, %v1392_v36 }
 0x6ba   : > { %v1394_v38 = vmul.f32 1.442695, %v1393_v37 }
 0x6bc   : > { %1869 = vpow2.f32 %v1394_v38 }
 0x6c6   : > { %v1870_v39 = vpop.eup %1869 }
 0x6c7   : > { %1804 = vmatmul.mubr.msk.f32.vlgmr.msra.gmra.mrb[12].mxu0 %vm590_vm2, %v1870_v39  ;;  %v1396_v40 = vsel %vm590_vm2, %v1870_v39, 0.0 }
 0x6c8   : > { %1397 = vadd.xlane.f32.xlu0 %v1396_v40 }
 0x6f8   : > { %v1306_v42 = vpop.f32.mrb[10].mxu0 }
 0x6f9   : > { %v1310_v43 = vadd.f32 %v1306_v42, %v1236_v41  ;;  %v1795_v11 = vpop.f32.mrb[11].mxu0 }
 0x6fb   : > { %1311 = vst.msk [vmem:[#allocation2] sm:$0xff] %vm408_vm1, %v1310_v43 }
 0x702   : > { %v1477_v49 = vld [vmem:[#allocation2] sm:$0xff] }
 0x755   : > { %v1398_v44 = vpop.xlane.xlu0 %1397 }
 0x756   : > { %1871 = vrcp.f32 %v1398_v44 }
 0x760   : > { %v1872_v45 = vpop.eup %1871 }
 0x79a   : > { %v1472_v46 = vpop.f32.mrb[12].mxu0 }
 0x79b   : > { %v1476_v47 = vmul.f32 %v1872_v45, %v1472_v46  ;;  %v1805_v48 = vpop.f32.mrb[13].mxu0 }
 0x79d   : > { %1809 = vmatmul.mubr.msk.f32.vlgmr.msra.gmra.mrb[12].mxu1 %vm590_vm2, %v1476_v47 }
 0x870   : > { %v1547_v50 = vpop.f32.mrb[12].mxu1 }
 0x871   : > { %v1551_v51 = vadd.f32 %v1547_v50, %v1477_v49  ;;  %v1810_v52 = vpop.f32.mrb[13].mxu1 }
 0x873   : > { %1552 = vst.msk [vmem:[#allocation2] sm:$0xff] %vm408_vm1, %v1551_v51 }
 0x87a   : > { %v1553_v53 = vld [vmem:[#allocation2] sm:$0xff] }
 0x87b   : > { %v1554_v54 = vsel %vm408_vm1, %v1553_v53, 0.0 }
 0x87c   : > { %1555 = vadd.xlane.f32.xlu0 %v1554_v54 }
 0x909   : > { %v1556_v55 = vpop.xlane.xlu0 %1555 }
 0x90a   : > { %v1558_v56 = vmul.f32 0.03125, %v1556_v55 }
 0x90c   : > { %v1559_v57 = vsub.f32 %v1553_v53, %v1558_v56 }
 0x90e   : > { %v1560_v58 = vmul.f32 %v1559_v57, %v1559_v57 }
 0x910   : > { %v1561_v59 = vsel %vm408_vm1, %v1560_v58, 0.0 }
 0x911   : > { %1562 = vadd.xlane.f32.xlu0 %v1561_v59 }
 0x99e   : > { %v1563_v60 = vpop.xlane.xlu0 %1562 }
 0x99f   : > { %v1564_v61 = vmul.f32 0.03125, %v1563_v60 }
 0x9a1   : > { %v1565_v62 = vadd.f32 1e-05, %v1564_v61 }
 0x9a3   : > { %1873 = vrsqrt.f32 %v1565_v62 }
 0x9ad   : > { %v1874_v63 = vpop.eup %1873 }
 0x9ae   : > { %v1567_v1 = vmul.f32 %v1874_v63, %v1559_v57 }
 0x9b0   : > { %v1575_v3 = vmul.f32 %v1691_v0, %v1567_v1 }
 0x9b2   : > { %v1583_v4 = vadd.f32 %v1692_v2, %v1575_v3 }
 0x9b4   : > { %1584 = vst.msk [vmem:[%s394_s19] sm:$0xff] %vm408_vm1, %v1583_v4 }
 0x9b5 PF: > { %s20_s15 = sadd.s32 1, %s1897_s15   ;;  %s2168_s13 = smov %s1893_s14 }
 0x9b6   : > { %p17_p5 = scmp.ge.s32.totalorder %s20_s15, 4   ;;  %s2169_s14 = smov %s2171_s16 }
 0x9b8   :  { %19 = sbr.rel (!%p17_p5) target bundleno = 2 (0x2), region = 93 }

</bundles_post_ra>
